<compile_context>
chip_gen: v6e
topology: v6e:2x2x1
jax: 0.10.0
libtpu: 0.0.40
codegen_flags: <defaults>
</compile_context>

<pallas_src>
import numpy as np
import jax
import jax.numpy as jnp
from jax import lax
from jax.experimental import pallas as pl
from jax.experimental.pallas import tpu as pltpu

# Small synthetic shapes (W*C == 128 keeps activations exactly one vreg wide).
N, C, H, W = 2, 8, 16, 16
H2, W2 = 2 * H, 2 * W
WC, W2C = W * C, W2 * C
NH, NH2 = N * H, N * H2
KC = 3 * WC                       # K of the K-concatenated 3x3-conv matmul

assert H & (H - 1) == 0, "in-kernel row mask uses `& (H-1)`; H must be a power of 2"


# ----------------------------- kernel ---------------------------------------

def ffb_kernel(x0_ref, x1_ref,
               wk1a_ref, b1a_ref, wk2a_ref, b2a_ref,
               wk1b_ref, b1b_ref, wk2b_ref, b2b_ref,
               wb_ref, boutw_ref, ahb_ref, out_ref):
    f32 = jnp.float32

    # Row masks (computed once, reused by all four convs): rows whose shifted
    # operand wrapped across an image / height boundary must be zero
    # (implements the height zero-padding of the 3x3 conv).
    row = lax.broadcasted_iota(jnp.int32, (NH, WC), 0)
    hrow = row & (H - 1)                       # row index within each image
    top = hrow == 0                            # first row of each image
    bot = hrow == (H - 1)                      # last row of each image

    def conv3x3(x, wk, b):
        """3x3 conv (stride 1, zero-pad 1) on a batched (N*H, W*C) slab.

        kh shifts are XLU sublane rolls (np.roll semantics: out[i] = in[i-s]),
        boundary rows zeroed on the VPU, then ONE MXU matmul against the
        K-concatenated (3*W*C, W*C) banded weight.
        """
        x_dn = jnp.where(top, 0.0, pltpu.roll(x, 1, axis=0))        # row i = x[i-1]
        x_up = jnp.where(bot, 0.0, pltpu.roll(x, NH - 1, axis=0))   # row i = x[i+1]
        xk = jnp.concatenate([x_dn, x, x_up], axis=1)               # (N*H, 3*W*C)
        return jnp.dot(xk, wk, preferred_element_type=f32) + b      # (N*H, W*C)

    def rcu(x, wk1, b1, wk2, b2):
        """ResidualConvUnit_custom (bn=False, groups=1, activation=ReLU)."""
        out = conv3x3(jnp.maximum(x, 0.0), wk1, b1)
        out = conv3x3(jnp.maximum(out, 0.0), wk2, b2)
        return out + x                          # skip_add.add(out, x)

    # Weights arrive as bf16 (half the DMA); upcast once to f32 (exact: the
    # raw conv weights are bf16-representable).  Accumulation stays f32.
    wk1a = wk1a_ref[...].astype(f32)
    wk2a = wk2a_ref[...].astype(f32)
    wk1b = wk1b_ref[...].astype(f32)
    wk2b = wk2b_ref[...].astype(f32)
    b1a = b1a_ref[...]; b2a = b2a_ref[...]
    b1b = b1b_ref[...]; b2b = b2b_ref[...]

    # Both images are batched into the matmul M dimension (N*H rows).
    # output = xs[0] + resConfUnit1(xs[1]); output = resConfUnit2(output)
    y = x0_ref[...] + rcu(x1_ref[...], wk1a, b1a, wk2a, b2a)
    z = rcu(y, wk1b, b1b, wk2b, b2b)

    # Fused 1x1 out_conv + width x2 bilinear upsample (align_corners=True):
    # one matmul.  (out_conv commutes with the interpolation because it is
    # per-channel linear and every bilinear row sums to 1; the bias is added
    # in the W2-tiled domain and survives the height upsample for the same
    # row-sum-1 reason.)
    zw = jnp.dot(z, wb_ref[...], preferred_element_type=f32) + boutw_ref[...]

    # Height x2 bilinear upsample for the whole batch at once via the
    # block-diagonal (N*H2, N*H) interpolation matrix; single lane-dense store.
    out_ref[...] = jnp.dot(ahb_ref[...], zw,
                           preferred_element_type=f32).astype(out_ref.dtype)


# ----------------------------- wrapper / param glue --------------------------

def _interp_matrix(n_in):
    """1-D bilinear x2 upsample matrix, PyTorch align_corners=True semantics."""
    n_out = 2 * n_in
    a = np.zeros((n_out, n_in), dtype=np.float32)
    if n_in == 1:
        a[:, 0] = 1.0
        return a
    scale = (n_in - 1) / (n_out - 1)
    for i in range(n_out):
        src = i * scale
        i0 = min(int(np.floor(src)), n_in - 1)
        i1 = min(i0 + 1, n_in - 1)
        frac = src - i0
        a[i, i0] += 1.0 - frac
        a[i, i1] += frac
    return a


def _conv_band_matrix(w):
    """HWIO (3,3,C,C) conv weight -> (3, W*C, W*C) banded lane-dense matmuls.

    Wm[kh, a*C+ci, b*C+co] = w[kh, kw, ci, co] with a = b + kw - 1; columns
    falling outside [0, W) are dropped, implementing the width zero-padding.
    """
    sel = np.zeros((W, W, 3), np.float32)
    for b in range(W):
        for kw in range(3):
            a = b + kw - 1
            if 0 <= a < W:
                sel[a, b, kw] = 1.0
    wm = jnp.einsum('abk,hkio->haibo', jnp.asarray(sel), w)
    return wm.reshape(3, WC, WC)


def _conv_weight_k(w):
    """K-concatenated (3*W*C, W*C) banded conv weight, stored bf16 for DMA."""
    return _conv_band_matrix(w).reshape(KC, WC).astype(jnp.bfloat16)


def _tile_bias(b, reps):
    """(1, C) bias -> (1, reps*C) lane-dense bias row."""
    return jnp.tile(b.reshape(1, C), (1, reps))


def feature_fusion_block(x0, x1, params):
    (w1a, b1a, w2a, b2a, w1b, b1b, w2b, b2b, wout, bout) = params

    # Banded, K-concatenated 3x3-conv matmul weights (bf16 on the wire).
    wk1a, wk2a = _conv_weight_k(w1a), _conv_weight_k(w2a)
    wk1b, wk2b = _conv_weight_k(w1b), _conv_weight_k(w2b)

    # Fused (1x1 out_conv ∘ width x2 bilinear) matrix, kept f32 for accuracy:
    # wb[w*C+ci, q*C+co] = a_w[q, w] * wout[ci, co].
    a_w = _interp_matrix(W)                                        # (W2, W)
    wb = jnp.einsum('qw,io->wiqo', jnp.asarray(a_w), wout).reshape(WC, W2C)
    bout_w2 = _tile_bias(bout, W2)                                 # (1, W2*C)

    # Block-diagonal height x2 upsample matrix over the whole batch.
    a_h = _interp_matrix(H)                                        # (H2, H)
    ahb = jnp.asarray(np.kron(np.eye(N, dtype=np.float32), a_h))   # (N*H2, N*H)

    # Lane-dense activations; batch folded into the matmul M dimension.
    x0r = x0.reshape(NH, WC)
    x1r = x1.reshape(NH, WC)

    args = (x0r, x1r,
            wk1a, _tile_bias(b1a, W), wk2a, _tile_bias(b2a, W),
            wk1b, _tile_bias(b1b, W), wk2b, _tile_bias(b2b, W),
            wb, bout_w2, ahb)

    def full(a):
        nd = a.ndim
        return pl.BlockSpec(a.shape, lambda i, _nd=nd: (0,) * _nd)

    out = pl.pallas_call(
        ffb_kernel,
        out_shape=jax.ShapeDtypeStruct((NH2, W2C), jnp.float32),
        grid=(1,),                           # whole batch in one step
        in_specs=[full(a) for a in args],
        out_specs=pl.BlockSpec((NH2, W2C), lambda i: (0, 0)),
        compiler_params=pltpu.CompilerParams(
            # Single step: nothing to parallelize.  For larger N on v7x, move
            # N onto the grid with ("parallel",) and constant weight index_maps.
            dimension_semantics=("arbitrary",)),
    )(*args)
    return out.reshape(N, H2, W2, C)


# ----------------------------- reference --------------------------------------

def _rcu_ref(x, w1, b1, w2, b2):
    def conv(y, wk, bk):
        o = lax.conv_general_dilated(
            y, wk, window_strides=(1, 1), padding=((1, 1), (1, 1)),
            dimension_numbers=('NHWC', 'HWIO', 'NHWC'))
        return o + bk.reshape(1, 1, 1, -1)
    a = jnp.maximum(x, 0.0)
    c1 = conv(a, w1, b1)
    a2 = jnp.maximum(c1, 0.0)
    c2 = conv(a2, w2, b2)
    return c2 + x


def ffb_reference(x0, x1, params, a_h, a_w):
    (w1a, b1a, w2a, b2a, w1b, b1b, w2b, b2b, wout, bout) = params
    y = x0 + _rcu_ref(x1, w1a, b1a, w2a, b2a)
    z = _rcu_ref(y, w1b, b1b, w2b, b2b)
    up = jnp.einsum('ih,nhwc->niwc', a_h, z)
    up = jnp.einsum('jw,niwc->nijc', a_w, up)
    return jnp.einsum('nijc,cd->nijd', up, wout) + bout.reshape(1, 1, 1, -1)


# ----------------------------- main ------------------------------------------

if __name__ == "__main__":
    key = jax.random.PRNGKey(0)
    ks = jax.random.split(key, 12)
    x0 = jax.random.normal(ks[0], (N, H, W, C), jnp.float32)
    x1 = jax.random.normal(ks[1], (N, H, W, C), jnp.float32)

    sc = 0.1

    def bf16_exact(a):
        # The 3x3 conv weights are shipped to the kernel as bf16; make the test
        # parameters bf16-representable so that path is bit-exact vs f32.
        return a.astype(jnp.bfloat16).astype(jnp.float32)

    w1a = bf16_exact(sc * jax.random.normal(ks[2], (3, 3, C, C), jnp.float32))
    b1a = sc * jax.random.normal(ks[3], (1, C), jnp.float32)
    w2a = bf16_exact(sc * jax.random.normal(ks[4], (3, 3, C, C), jnp.float32))
    b2a = sc * jax.random.normal(ks[5], (1, C), jnp.float32)
    w1b = bf16_exact(sc * jax.random.normal(ks[6], (3, 3, C, C), jnp.float32))
    b1b = sc * jax.random.normal(ks[7], (1, C), jnp.float32)
    w2b = bf16_exact(sc * jax.random.normal(ks[8], (3, 3, C, C), jnp.float32))
    b2b = sc * jax.random.normal(ks[9], (1, C), jnp.float32)
    wout = sc * jax.random.normal(ks[10], (C, C), jnp.float32)   # expand=False
    bout = sc * jax.random.normal(ks[11], (1, C), jnp.float32)
    params = (w1a, b1a, w2a, b2a, w1b, b1b, w2b, b2b, wout, bout)

    out = feature_fusion_block(x0, x1, params)
    out = jax.block_until_ready(out)

    a_h = jnp.asarray(_interp_matrix(H))
    a_w = jnp.asarray(_interp_matrix(W))
    with jax.default_matmul_precision("highest"):
        ref = ffb_reference(x0, x1, params, a_h, a_w)

    # Tolerance covers the case where f32 matmuls are emulated with bf16 MXU
    # passes; with full-f32 matmuls the actual error is ~1e-5.
    np.testing.assert_allclose(np.asarray(out), np.asarray(ref),
                               rtol=2e-2, atol=2e-2)
    print("KERNEL_OK")
</pallas_src>

<mosaic_0001>
module attributes {stable_mosaic.version = 11 : i64} {
  func.func @ffb_kernel(%arg0: i32, %arg1: memref<32x128xf32, #tpu.memory_space<vmem>>, %arg2: memref<32x128xf32, #tpu.memory_space<vmem>>, %arg3: memref<384x128xbf16, #tpu.memory_space<vmem>>, %arg4: memref<1x128xf32, #tpu.memory_space<vmem>>, %arg5: memref<384x128xbf16, #tpu.memory_space<vmem>>, %arg6: memref<1x128xf32, #tpu.memory_space<vmem>>, %arg7: memref<384x128xbf16, #tpu.memory_space<vmem>>, %arg8: memref<1x128xf32, #tpu.memory_space<vmem>>, %arg9: memref<384x128xbf16, #tpu.memory_space<vmem>>, %arg10: memref<1x128xf32, #tpu.memory_space<vmem>>, %arg11: memref<128x256xf32, #tpu.memory_space<vmem>>, %arg12: memref<1x256xf32, #tpu.memory_space<vmem>>, %arg13: memref<64x32xf32, #tpu.memory_space<vmem>>, %arg14: memref<64x256xf32, #tpu.memory_space<vmem>>) attributes {dimension_semantics = [#tpu.dimension_semantics<arbitrary>], iteration_bounds = array<i64: 1>, scalar_prefetch = 0 : i64, scratch_operands = 0 : i64, tpu.core_type = #tpu.core_type<tc>, window_params = [{pipeline_mode = #tpu.pipeline_mode<synchronous>, transform_indices = @transform_0, window_bounds = array<i64: 32, 128>}, {pipeline_mode = #tpu.pipeline_mode<synchronous>, transform_indices = @transform_1, window_bounds = array<i64: 32, 128>}, {pipeline_mode = #tpu.pipeline_mode<synchronous>, transform_indices = @transform_2, window_bounds = array<i64: 384, 128>}, {pipeline_mode = #tpu.pipeline_mode<synchronous>, transform_indices = @transform_3, window_bounds = array<i64: 1, 128>}, {pipeline_mode = #tpu.pipeline_mode<synchronous>, transform_indices = @transform_4, window_bounds = array<i64: 384, 128>}, {pipeline_mode = #tpu.pipeline_mode<synchronous>, transform_indices = @transform_5, window_bounds = array<i64: 1, 128>}, {pipeline_mode = #tpu.pipeline_mode<synchronous>, transform_indices = @transform_6, window_bounds = array<i64: 384, 128>}, {pipeline_mode = #tpu.pipeline_mode<synchronous>, transform_indices = @transform_7, window_bounds = array<i64: 1, 128>}, {pipeline_mode = #tpu.pipeline_mode<synchronous>, transform_indices = @transform_8, window_bounds = array<i64: 384, 128>}, {pipeline_mode = #tpu.pipeline_mode<synchronous>, transform_indices = @transform_9, window_bounds = array<i64: 1, 128>}, {pipeline_mode = #tpu.pipeline_mode<synchronous>, transform_indices = @transform_10, window_bounds = array<i64: 128, 256>}, {pipeline_mode = #tpu.pipeline_mode<synchronous>, transform_indices = @transform_11, window_bounds = array<i64: 1, 256>}, {pipeline_mode = #tpu.pipeline_mode<synchronous>, transform_indices = @transform_12, window_bounds = array<i64: 64, 32>}, {pipeline_mode = #tpu.pipeline_mode<synchronous>, transform_indices = @transform_13, window_bounds = array<i64: 64, 256>}]} {
    %0 = tpu.iota {dimensions = array<i32: 0>} : vector<32x128xi32>
    %c15_i32 = arith.constant 15 : i32
    %1 = vector.broadcast %c15_i32 : i32 to vector<32x128xi32>
    %2 = arith.andi %0, %1 : vector<32x128xi32>
    %c0_i32 = arith.constant 0 : i32
    %3 = vector.broadcast %c0_i32 : i32 to vector<32x128xi32>
    %4 = arith.cmpi eq, %2, %3 : vector<32x128xi32>
    %c15_i32_0 = arith.constant 15 : i32
    %5 = vector.broadcast %c15_i32_0 : i32 to vector<32x128xi32>
    %6 = arith.cmpi eq, %2, %5 : vector<32x128xi32>
    %c0 = arith.constant 0 : index
    %c0_1 = arith.constant 0 : index
    %7 = vector.load %arg3[%c0, %c0_1] : memref<384x128xbf16, #tpu.memory_space<vmem>>, vector<384x128xbf16>
    %8 = arith.extf %7 : vector<384x128xbf16> to vector<384x128xf32>
    %c0_2 = arith.constant 0 : index
    %c0_3 = arith.constant 0 : index
    %9 = vector.load %arg5[%c0_2, %c0_3] : memref<384x128xbf16, #tpu.memory_space<vmem>>, vector<384x128xbf16>
    %10 = arith.extf %9 : vector<384x128xbf16> to vector<384x128xf32>
    %c0_4 = arith.constant 0 : index
    %c0_5 = arith.constant 0 : index
    %11 = vector.load %arg7[%c0_4, %c0_5] : memref<384x128xbf16, #tpu.memory_space<vmem>>, vector<384x128xbf16>
    %12 = arith.extf %11 : vector<384x128xbf16> to vector<384x128xf32>
    %c0_6 = arith.constant 0 : index
    %c0_7 = arith.constant 0 : index
    %13 = vector.load %arg9[%c0_6, %c0_7] : memref<384x128xbf16, #tpu.memory_space<vmem>>, vector<384x128xbf16>
    %14 = arith.extf %13 : vector<384x128xbf16> to vector<384x128xf32>
    %c0_8 = arith.constant 0 : index
    %c0_9 = arith.constant 0 : index
    %15 = vector.load %arg4[%c0_8, %c0_9] : memref<1x128xf32, #tpu.memory_space<vmem>>, vector<1x128xf32>
    %c0_10 = arith.constant 0 : index
    %c0_11 = arith.constant 0 : index
    %16 = vector.load %arg6[%c0_10, %c0_11] : memref<1x128xf32, #tpu.memory_space<vmem>>, vector<1x128xf32>
    %c0_12 = arith.constant 0 : index
    %c0_13 = arith.constant 0 : index
    %17 = vector.load %arg8[%c0_12, %c0_13] : memref<1x128xf32, #tpu.memory_space<vmem>>, vector<1x128xf32>
    %c0_14 = arith.constant 0 : index
    %c0_15 = arith.constant 0 : index
    %18 = vector.load %arg10[%c0_14, %c0_15] : memref<1x128xf32, #tpu.memory_space<vmem>>, vector<1x128xf32>
    %c0_16 = arith.constant 0 : index
    %c0_17 = arith.constant 0 : index
    %19 = vector.load %arg1[%c0_16, %c0_17] : memref<32x128xf32, #tpu.memory_space<vmem>>, vector<32x128xf32>
    %c0_18 = arith.constant 0 : index
    %c0_19 = arith.constant 0 : index
    %20 = vector.load %arg2[%c0_18, %c0_19] : memref<32x128xf32, #tpu.memory_space<vmem>>, vector<32x128xf32>
    %cst = arith.constant 0.000000e+00 : f32
    %21 = vector.broadcast %cst : f32 to vector<32x128xf32>
    %22 = arith.maximumf %20, %21 : vector<32x128xf32>
    %c1_i32 = arith.constant 1 : i32
    %23 = tpu.dynamic_rotate %22 by %c1_i32 dim 0 : vector<32x128xf32>, i32 -> vector<32x128xf32>
    %cst_20 = arith.constant 0.000000e+00 : f32
    %24 = vector.broadcast %cst_20 : f32 to vector<32x128xf32>
    %25 = arith.select %4, %24, %23 : vector<32x128xi1>, vector<32x128xf32>
    %c31_i32 = arith.constant 31 : i32
    %26 = tpu.dynamic_rotate %22 by %c31_i32 dim 0 : vector<32x128xf32>, i32 -> vector<32x128xf32>
    %cst_21 = arith.constant 0.000000e+00 : f32
    %27 = vector.broadcast %cst_21 : f32 to vector<32x128xf32>
    %28 = arith.select %6, %27, %26 : vector<32x128xi1>, vector<32x128xf32>
    %29 = tpu.concatenate %25, %22, %28 in 1 : vector<32x128xf32>, vector<32x128xf32>, vector<32x128xf32> -> vector<32x384xf32>
    %cst_22 = arith.constant dense<0.000000e+00> : vector<32x128xf32>
    %30 = tpu.matmul %29, %8, %cst_22 {dimension_numbers = #tpu.dot_dimension_numbers<[1], [0], [0], [1], [0, 0, 1, 1], [], []>} : vector<32x384xf32>, vector<384x128xf32>, vector<32x128xf32> -> vector<32x128xf32>
    %31 = vector.broadcast %15 : vector<1x128xf32> to vector<32x128xf32>
    %32 = arith.addf %30, %31 : vector<32x128xf32>
    %cst_23 = arith.constant 0.000000e+00 : f32
    %33 = vector.broadcast %cst_23 : f32 to vector<32x128xf32>
    %34 = arith.maximumf %32, %33 : vector<32x128xf32>
    %c1_i32_24 = arith.constant 1 : i32
    %35 = tpu.dynamic_rotate %34 by %c1_i32_24 dim 0 : vector<32x128xf32>, i32 -> vector<32x128xf32>
    %cst_25 = arith.constant 0.000000e+00 : f32
    %36 = vector.broadcast %cst_25 : f32 to vector<32x128xf32>
    %37 = arith.select %4, %36, %35 : vector<32x128xi1>, vector<32x128xf32>
    %c31_i32_26 = arith.constant 31 : i32
    %38 = tpu.dynamic_rotate %34 by %c31_i32_26 dim 0 : vector<32x128xf32>, i32 -> vector<32x128xf32>
    %cst_27 = arith.constant 0.000000e+00 : f32
    %39 = vector.broadcast %cst_27 : f32 to vector<32x128xf32>
    %40 = arith.select %6, %39, %38 : vector<32x128xi1>, vector<32x128xf32>
    %41 = tpu.concatenate %37, %34, %40 in 1 : vector<32x128xf32>, vector<32x128xf32>, vector<32x128xf32> -> vector<32x384xf32>
    %cst_28 = arith.constant dense<0.000000e+00> : vector<32x128xf32>
    %42 = tpu.matmul %41, %10, %cst_28 {dimension_numbers = #tpu.dot_dimension_numbers<[1], [0], [0], [1], [0, 0, 1, 1], [], []>} : vector<32x384xf32>, vector<384x128xf32>, vector<32x128xf32> -> vector<32x128xf32>
    %43 = vector.broadcast %16 : vector<1x128xf32> to vector<32x128xf32>
    %44 = arith.addf %42, %43 : vector<32x128xf32>
    %45 = arith.addf %44, %20 : vector<32x128xf32>
    %46 = arith.addf %19, %45 : vector<32x128xf32>
    %cst_29 = arith.constant 0.000000e+00 : f32
    %47 = vector.broadcast %cst_29 : f32 to vector<32x128xf32>
    %48 = arith.maximumf %46, %47 : vector<32x128xf32>
    %c1_i32_30 = arith.constant 1 : i32
    %49 = tpu.dynamic_rotate %48 by %c1_i32_30 dim 0 : vector<32x128xf32>, i32 -> vector<32x128xf32>
    %cst_31 = arith.constant 0.000000e+00 : f32
    %50 = vector.broadcast %cst_31 : f32 to vector<32x128xf32>
    %51 = arith.select %4, %50, %49 : vector<32x128xi1>, vector<32x128xf32>
    %c31_i32_32 = arith.constant 31 : i32
    %52 = tpu.dynamic_rotate %48 by %c31_i32_32 dim 0 : vector<32x128xf32>, i32 -> vector<32x128xf32>
    %cst_33 = arith.constant 0.000000e+00 : f32
    %53 = vector.broadcast %cst_33 : f32 to vector<32x128xf32>
    %54 = arith.select %6, %53, %52 : vector<32x128xi1>, vector<32x128xf32>
    %55 = tpu.concatenate %51, %48, %54 in 1 : vector<32x128xf32>, vector<32x128xf32>, vector<32x128xf32> -> vector<32x384xf32>
    %cst_34 = arith.constant dense<0.000000e+00> : vector<32x128xf32>
    %56 = tpu.matmul %55, %12, %cst_34 {dimension_numbers = #tpu.dot_dimension_numbers<[1], [0], [0], [1], [0, 0, 1, 1], [], []>} : vector<32x384xf32>, vector<384x128xf32>, vector<32x128xf32> -> vector<32x128xf32>
    %57 = vector.broadcast %17 : vector<1x128xf32> to vector<32x128xf32>
    %58 = arith.addf %56, %57 : vector<32x128xf32>
    %cst_35 = arith.constant 0.000000e+00 : f32
    %59 = vector.broadcast %cst_35 : f32 to vector<32x128xf32>
    %60 = arith.maximumf %58, %59 : vector<32x128xf32>
    %c1_i32_36 = arith.constant 1 : i32
    %61 = tpu.dynamic_rotate %60 by %c1_i32_36 dim 0 : vector<32x128xf32>, i32 -> vector<32x128xf32>
    %cst_37 = arith.constant 0.000000e+00 : f32
    %62 = vector.broadcast %cst_37 : f32 to vector<32x128xf32>
    %63 = arith.select %4, %62, %61 : vector<32x128xi1>, vector<32x128xf32>
    %c31_i32_38 = arith.constant 31 : i32
    %64 = tpu.dynamic_rotate %60 by %c31_i32_38 dim 0 : vector<32x128xf32>, i32 -> vector<32x128xf32>
    %cst_39 = arith.constant 0.000000e+00 : f32
    %65 = vector.broadcast %cst_39 : f32 to vector<32x128xf32>
    %66 = arith.select %6, %65, %64 : vector<32x128xi1>, vector<32x128xf32>
    %67 = tpu.concatenate %63, %60, %66 in 1 : vector<32x128xf32>, vector<32x128xf32>, vector<32x128xf32> -> vector<32x384xf32>
    %cst_40 = arith.constant dense<0.000000e+00> : vector<32x128xf32>
    %68 = tpu.matmul %67, %14, %cst_40 {dimension_numbers = #tpu.dot_dimension_numbers<[1], [0], [0], [1], [0, 0, 1, 1], [], []>} : vector<32x384xf32>, vector<384x128xf32>, vector<32x128xf32> -> vector<32x128xf32>
    %69 = vector.broadcast %18 : vector<1x128xf32> to vector<32x128xf32>
    %70 = arith.addf %68, %69 : vector<32x128xf32>
    %71 = arith.addf %70, %46 : vector<32x128xf32>
    %c0_41 = arith.constant 0 : index
    %c0_42 = arith.constant 0 : index
    %72 = vector.load %arg11[%c0_41, %c0_42] : memref<128x256xf32, #tpu.memory_space<vmem>>, vector<128x256xf32>
    %cst_43 = arith.constant dense<0.000000e+00> : vector<32x256xf32>
    %73 = tpu.matmul %71, %72, %cst_43 {dimension_numbers = #tpu.dot_dimension_numbers<[1], [0], [0], [1], [0, 0, 1, 1], [], []>} : vector<32x128xf32>, vector<128x256xf32>, vector<32x256xf32> -> vector<32x256xf32>
    %c0_44 = arith.constant 0 : index
    %c0_45 = arith.constant 0 : index
    %74 = vector.load %arg12[%c0_44, %c0_45] : memref<1x256xf32, #tpu.memory_space<vmem>>, vector<1x256xf32>
    %75 = vector.broadcast %74 : vector<1x256xf32> to vector<32x256xf32>
    %76 = arith.addf %73, %75 : vector<32x256xf32>
    %c0_46 = arith.constant 0 : index
    %c0_47 = arith.constant 0 : index
    %77 = vector.load %arg13[%c0_46, %c0_47] : memref<64x32xf32, #tpu.memory_space<vmem>>, vector<64x32xf32>
    %cst_48 = arith.constant dense<0.000000e+00> : vector<64x256xf32>
    %78 = tpu.matmul %77, %76, %cst_48 {dimension_numbers = #tpu.dot_dimension_numbers<[1], [0], [0], [1], [0, 0, 1, 1], [], []>} : vector<64x32xf32>, vector<32x256xf32>, vector<64x256xf32> -> vector<64x256xf32>
    %c0_49 = arith.constant 0 : index
    %c0_50 = arith.constant 0 : index
    %79 = vector.load %arg14[%c0_49, %c0_50] : memref<64x256xf32, #tpu.memory_space<vmem>>, vector<64x256xf32>
    tpu.vector_store %arg14[%c0_49, %c0_50], %78 {strides = array<i32>} : memref<64x256xf32, #tpu.memory_space<vmem>>, vector<64x256xf32>,
    return
  }
  func.func @transform_0(%arg0: i32) -> (i32, i32) {
    %c0_i32 = arith.constant 0 : i32
    %c0_i32_0 = arith.constant 0 : i32
    %c0_i32_1 = arith.constant 0 : i32
    return %c0_i32, %c0_i32_0 : i32, i32
  }
  func.func @transform_1(%arg0: i32) -> (i32, i32) {
    %c0_i32 = arith.constant 0 : i32
    %c0_i32_0 = arith.constant 0 : i32
    %c0_i32_1 = arith.constant 0 : i32
    return %c0_i32, %c0_i32_0 : i32, i32
  }
  func.func @transform_2(%arg0: i32) -> (i32, i32) {
    %c0_i32 = arith.constant 0 : i32
    %c0_i32_0 = arith.constant 0 : i32
    %c0_i32_1 = arith.constant 0 : i32
    return %c0_i32, %c0_i32_0 : i32, i32
  }
  func.func @transform_3(%arg0: i32) -> (i32, i32) {
    %c0_i32 = arith.constant 0 : i32
    %c0_i32_0 = arith.constant 0 : i32
    %c0_i32_1 = arith.constant 0 : i32
    return %c0_i32, %c0_i32_0 : i32, i32
  }
  func.func @transform_4(%arg0: i32) -> (i32, i32) {
    %c0_i32 = arith.constant 0 : i32
    %c0_i32_0 = arith.constant 0 : i32
    %c0_i32_1 = arith.constant 0 : i32
    return %c0_i32, %c0_i32_0 : i32, i32
  }
  func.func @transform_5(%arg0: i32) -> (i32, i32) {
    %c0_i32 = arith.constant 0 : i32
    %c0_i32_0 = arith.constant 0 : i32
    %c0_i32_1 = arith.constant 0 : i32
    return %c0_i32, %c0_i32_0 : i32, i32
  }
  func.func @transform_6(%arg0: i32) -> (i32, i32) {
    %c0_i32 = arith.constant 0 : i32
    %c0_i32_0 = arith.constant 0 : i32
    %c0_i32_1 = arith.constant 0 : i32
    return %c0_i32, %c0_i32_0 : i32, i32
  }
  func.func @transform_7(%arg0: i32) -> (i32, i32) {
    %c0_i32 = arith.constant 0 : i32
    %c0_i32_0 = arith.constant 0 : i32
    %c0_i32_1 = arith.constant 0 : i32
    return %c0_i32, %c0_i32_0 : i32, i32
  }
  func.func @transform_8(%arg0: i32) -> (i32, i32) {
    %c0_i32 = arith.constant 0 : i32
    %c0_i32_0 = arith.constant 0 : i32
    %c0_i32_1 = arith.constant 0 : i32
    return %c0_i32, %c0_i32_0 : i32, i32
  }
  func.func @transform_9(%arg0: i32) -> (i32, i32) {
    %c0_i32 = arith.constant 0 : i32
    %c0_i32_0 = arith.constant 0 : i32
    %c0_i32_1 = arith.constant 0 : i32
    return %c0_i32, %c0_i32_0 : i32, i32
  }
  func.func @transform_10(%arg0: i32) -> (i32, i32) {
    %c0_i32 = arith.constant 0 : i32
    %c0_i32_0 = arith.constant 0 : i32
    %c0_i32_1 = arith.constant 0 : i32
    return %c0_i32, %c0_i32_0 : i32, i32
  }
  func.func @transform_11(%arg0: i32) -> (i32, i32) {
    %c0_i32 = arith.constant 0 : i32
    %c0_i32_0 = arith.constant 0 : i32
    %c0_i32_1 = arith.constant 0 : i32
    return %c0_i32, %c0_i32_0 : i32, i32
  }
  func.func @transform_12(%arg0: i32) -> (i32, i32) {
    %c0_i32 = arith.constant 0 : i32
    %c0_i32_0 = arith.constant 0 : i32
    %c0_i32_1 = arith.constant 0 : i32
    return %c0_i32, %c0_i32_0 : i32, i32
  }
  func.func @transform_13(%arg0: i32) -> (i32, i32) {
    %c0_i32 = arith.constant 0 : i32
    %c0_i32_0 = arith.constant 0 : i32
    %c0_i32_1 = arith.constant 0 : i32
    return %c0_i32, %c0_i32_0 : i32, i32
  }
}

</mosaic_0001>

<bundles_post_ra>
// kernel: tpu_custom_call.1
= control target key start
LH: loop header
LB: loop body
LE: loop exit
PB: predicated region body
PF: predicated region fallthrough
CT: control target
= control target key end

     0   :  { %18 = vsyncpa [#allocation3], 0  ;;  %s3131_s0 = inlined_call_operand.vmem [shape: f32[32,128], index: 0, kind: input, shape index: {}]   ;;  %s3132_s1 = inlined_call_operand.vmem [shape: f32[32,128], index: 1, kind: input, shape index: {}]   ;;  %s3133_s2 = inlined_call_operand.hbm [shape: bf16[384,128], index: 2, kind: input, shape index: {}]   ;;  %s3134_s3 = inlined_call_operand.vmem [shape: f32[1,128], index: 3, kind: input, shape index: {}]   ;;  %s3135_s4 = inlined_call_operand.hbm [shape: bf16[384,128], index: 4, kind: input, shape index: {}]   ;;  %s3136_s5 = inlined_call_operand.vmem [shape: f32[1,128], index: 5, kind: input, shape index: {}]   ;;  %s3137_s6 = inlined_call_operand.hbm [shape: bf16[384,128], index: 6, kind: input, shape index: {}]   ;;  %s3138_s7 = inlined_call_operand.vmem [shape: f32[1,128], index: 7, kind: input, shape index: {}]   ;;  %s3139_s8 = inlined_call_operand.hbm [shape: bf16[384,128], index: 8, kind: input, shape index: {}]   ;;  %s3140_s9 = inlined_call_operand.vmem [shape: f32[1,128], index: 9, kind: input, shape index: {}]   ;;  %s3141_s10 = inlined_call_operand.hbm [shape: f32[128,256], index: 10, kind: input, shape index: {}]   ;;  %s3142_s11 = inlined_call_operand.vmem [shape: f32[1,256], index: 11, kind: input, shape index: {}]   ;;  %s3143_s12 = inlined_call_operand.vmem [shape: f32[64,32], index: 12, kind: input, shape index: {}]   ;;  %s3144_s13 = inlined_call_operand.hbm [shape: f32[64,256], index: 13, kind: output, shape index: {}]  }
   0x1   :  { %19 = vsyncpa [#allocation6], 0 }
   0x2   :  { %20 = vsyncpa [#allocation9], 0 }
   0x3   :  { %21 = vsyncpa [#allocation4], 0  ;;  %s2741_s25 = smov [#allocation5]   ;;  %s2742_s27 = smov [#allocation8]  }
   0x4   :  { %s45_s26 = sshll.u32 %s2741_s25, 4  ;;  %s73_s28 = sshll.u32 %s2742_s27, 4  ;;  %s46_s26 = int_to_ptr.vmem [resolvable:$true] %s45_s26  ;;  %s74_s28 = int_to_ptr.vmem [resolvable:$true] %s73_s28 }
   0x5   :  { %s2621_s29 = scalar_lea.vmem %s46_s26, 3072  ;;  %p2626_p1 = scmp.lt.s32.totalorder %s46_s26, %s46_s26 }
   0x6   :  { %p2622_p0 = scmp.ne.s32.totalorder %s46_s26, %s2621_s29  ;;  %p2627_p2 = scmp.lt.s32.totalorder %s2621_s29, %s2621_s29 }
   0x8   :  { %p2628_p3 = por %p2627_p2, %p2626_p1 }
   0xa   :  { %p2629_p4 = pnand %p2628_p3, %p2622_p0 }
   0xc   :  { %2632 = shalt.err (!%p2629_p4)
}
   0xd   :  { %s2743_s30 = smov 64   ;;  %s2744_s14 = smov 4  }
   0xe   :  { %51 = dma.hbm_to_vmem [thread:$0]  %s3135_s4, 3072, %s46_s26, [#allocation6], %s2743_s30, %s2743_s30, %s2744_s14  }
   0xf   :  { %s2641_s17 = scalar_lea.vmem %s74_s28, 3072  ;;  %p2646_p6 = scmp.lt.s32.totalorder %s74_s28, %s74_s28 }
  0x10   :  { %p2642_p5 = scmp.ne.s32.totalorder %s74_s28, %s2641_s17  ;;  %p2647_p7 = scmp.lt.s32.totalorder %s2641_s17, %s2641_s17 }
  0x12   :  { %p2648_p8 = por %p2647_p7, %p2646_p6 }
  0x14   :  { %p2649_p9 = pnand %p2648_p8, %p2642_p5 }
  0x16   :  { %2652 = shalt.err (!%p2649_p9)
}
  0x17   :  { %79 = dma.hbm_to_vmem [thread:$0]  %s3139_s8, 3072, %s74_s28, [#allocation9], %s2743_s30, %s2743_s30, %s2744_s14  }
  0x18   :  { %s2745_s20 = smov [#allocation2]   ;;  %s2746_s22 = smov [#allocation7]  }
  0x19   :  { %s31_s21 = sshll.u32 %s2745_s20, 4  ;;  %s59_s23 = sshll.u32 %s2746_s22, 4  ;;  %s32_s21 = int_to_ptr.vmem [resolvable:$true] %s31_s21  ;;  %s60_s23 = int_to_ptr.vmem [resolvable:$true] %s59_s23 }
  0x1a   :  { %s2661_s4 = scalar_lea.vmem %s32_s21, 3072  ;;  %p2666_p11 = scmp.lt.s32.totalorder %s32_s21, %s32_s21 }
  0x1b   :  { %p2662_p10 = scmp.ne.s32.totalorder %s32_s21, %s2661_s4  ;;  %p2667_p12 = scmp.lt.s32.totalorder %s2661_s4, %s2661_s4 }
  0x1d   :  { %p2668_p13 = por %p2667_p12, %p2666_p11 }
  0x1f   :  { %p2669_p0 = pnand %p2668_p13, %p2662_p10 }
  0x21   :  { %2672 = shalt.err (!%p2669_p0)
}
  0x22   :  { %37 = dma.hbm_to_vmem [thread:$0]  %s3133_s2, 3072, %s32_s21, [#allocation3], %s2743_s30, %s2743_s30, %s2744_s14  }
  0x23   :  { %s2681_s8 = scalar_lea.vmem %s60_s23, 3072  ;;  %p2686_p2 = scmp.lt.s32.totalorder %s60_s23, %s60_s23 }
  0x24   :  { %p2682_p1 = scmp.ne.s32.totalorder %s60_s23, %s2681_s8  ;;  %p2687_p3 = scmp.lt.s32.totalorder %s2681_s8, %s2681_s8 }
  0x26   :  { %p2688_p4 = por %p2687_p3, %p2686_p2 }
  0x28   :  { %p2689_p5 = pnand %p2688_p4, %p2682_p1 }
  0x2a   :  { %2692 = shalt.err (!%p2689_p5)
}
  0x2b   :  { %65 = dma.hbm_to_vmem [thread:$0]  %s3137_s6, 3072, %s60_s23, [#allocation6], %s2743_s30, %s2743_s30, %s2744_s14  }
  0x2c   :  { %s2747_s28 = smov [#allocation10]  }
  0x2d   :  { %s87_s29 = sshll.u32 %s2747_s28, 4  ;;  %s88_s29 = int_to_ptr.vmem [resolvable:$true] %s87_s29 }
  0x2e   :  { %s2701_s15 = scalar_lea.vmem %s88_s29, 4096  ;;  %p2706_p7 = scmp.lt.s32.totalorder %s88_s29, %s88_s29 }
  0x2f   :  { %p2702_p6 = scmp.ne.s32.totalorder %s88_s29, %s2701_s15  ;;  %p2707_p8 = scmp.lt.s32.totalorder %s2701_s15, %s2701_s15 }
  0x31   :  { %p2708_p9 = por %p2707_p8, %p2706_p7 }
  0x33   :  { %p2709_p10 = pnand %p2708_p9, %p2702_p6 }
  0x35   :  { %2712 = shalt.err (!%p2709_p10)
}
  0x36   :  { %s2748_s2 = smov 256   ;;  %s2749_s16 = smov 16  }
  0x37   :  { %93 = dma.hbm_to_vmem [thread:$0]  %s3141_s10, 4096, %s88_s29, [#allocation9], %s2748_s2, %s2748_s2, %s2749_s16  }
  0x38   :  { %2733 = dma.done.wait [#allocation3], 3072  }
  0x39   :  { %2734 = vsyncadd [#allocation3], 4294964224 }
  0x3a   :  { %2735 = dma.done.wait [#allocation6], 6144  }
  0x3b   :  { %2736 = vsyncadd [#allocation6], 4294961152 }
  0x3c   :  { %2737 = dma.done.wait [#allocation9], 7168  }
  0x3d   :  { %2738 = vsyncadd [#allocation9], 4294960128  ;;  %v2112_v0 = vld [vmem:[#allocation2 + $0x78] sm:$0xff]   ;;  %v2111_v2 = vld [vmem:[#allocation2 + $0x70] sm:$0xff]   ;;  %v113_v49 = vlaneseq  ;;  %vm1497_vm6 = vcmask 261120  }
  0x3e   :  { %v2104_v1 = vld [vmem:[#allocation2 + $0x38] sm:$0xff]   ;;  %v1776_v3 = vunpack.c.l.bf16 %v2112_v0  ;;  %v1777_v4 = vunpack.c.h.bf16 %v2112_v0  ;;  %v2103_v7 = vld [vmem:[#allocation2 + $0x30] sm:$0xff]   ;;  %v1773_v12 = vunpack.c.h.bf16 %v2111_v2  ;;  %v2110_v14 = vld [vmem:[#allocation2 + $0x68] sm:$0xff]   ;;  %v1772_v16 = vunpack.c.l.bf16 %v2111_v2 }
  0x3f   :  { %v1745_v5 = vunpack.c.h.bf16 %v2104_v1  ;;  %v2120_v6 = vld [vmem:[#allocation2 + $0xb8] sm:$0xff]   ;;  %v1744_v8 = vunpack.c.l.bf16 %v2104_v1  ;;  %v2119_v11 = vld [vmem:[#allocation2 + $0xb0] sm:$0xff]   ;;  %v1741_v13 = vunpack.c.h.bf16 %v2103_v7  ;;  %v2102_v17 = vld [vmem:[#allocation2 + $0x28] sm:$0xff]   ;;  %v1740_v19 = vunpack.c.l.bf16 %v2103_v7 }
  0x40   :  { %v1808_v9 = vunpack.c.l.bf16 %v2120_v6  ;;  %v1809_v10 = vunpack.c.h.bf16 %v2120_v6  ;;  %2194 = vmatprep.subr.mxu0 %v1777_v4  ;;  %v1805_v15 = vunpack.c.h.bf16 %v2119_v11  ;;  %v2118_v18 = vld [vmem:[#allocation2 + $0xa8] sm:$0xff]   ;;  %v1804_v20 = vunpack.c.l.bf16 %v2119_v11  ;;  %v2109_v23 = vld [vmem:[#allocation2 + $0x60] sm:$0xff]   ;;  %v2108_v32 = vld [vmem:[#allocation2 + $0x58] sm:$0xff]  }
  0x41   :  { %2195 = vmatpush3.msra.mxu0 %v1745_v5  ;;  %v1769_v21 = vunpack.c.h.bf16 %v2110_v14  ;;  %v1737_v22 = vunpack.c.h.bf16 %v2102_v17  ;;  %v1801_v24 = vunpack.c.h.bf16 %v2118_v18  ;;  %v1768_v25 = vunpack.c.l.bf16 %v2110_v14  ;;  %v2101_v26 = vld [vmem:[#allocation2 + $0x20] sm:$0xff]   ;;  %v2100_v35 = vld [vmem:[#allocation2 + $0x18] sm:$0xff]   ;;  %v2107_v41 = vld [vmem:[#allocation2 + $0x50] sm:$0xff]  }
  0x42   :  { %2450 = vmatprep.subr.mxu1 %v1809_v10  ;;  %2196 = vmatprep.subr.mxu0 %v1776_v3  ;;  %v2117_v27 = vld [vmem:[#allocation2 + $0xa0] sm:$0xff]   ;;  %v1736_v28 = vunpack.c.l.bf16 %v2102_v17  ;;  %v1800_v29 = vunpack.c.l.bf16 %v2118_v18  ;;  %v1765_v30 = vunpack.c.h.bf16 %v2109_v23  ;;  %v1733_v31 = vunpack.c.h.bf16 %v2101_v26  ;;  %v2116_v36 = vld [vmem:[#allocation2 + $0x98] sm:$0xff]   ;;  %v2099_v44 = vld [vmem:[#allocation2 + $0x10] sm:$0xff]  }
  0x43   :  { %2451 = vmatpush3.msra.mxu1 %v1809_v10  ;;  %2197 = vmatpush3.msra.mxu0 %v1744_v8  ;;  %v1797_v33 = vunpack.c.h.bf16 %v2117_v27  ;;  %v1764_v34 = vunpack.c.l.bf16 %v2109_v23  ;;  %v1732_v37 = vunpack.c.l.bf16 %v2101_v26  ;;  %v1796_v38 = vunpack.c.l.bf16 %v2117_v27  ;;  %v2115_v45 = vld [vmem:[#allocation2 + $0x90] sm:$0xff]   ;;  %v2106_v51 = vld [vmem:[#allocation2 + $0x48] sm:$0xff]   ;;  %v2855_v56 = vld [vmem:[%s3132_s1] sm:$0xff] }
  0x44   :  { %2452 = vmatprep.subr.mxu1 %v1808_v9  ;;  %2198 = vmatprep.subr.mxu0 %v1773_v12  ;;  %v1761_v39 = vunpack.c.h.bf16 %v2108_v32  ;;  %v1729_v40 = vunpack.c.h.bf16 %v2100_v35  ;;  %v1793_v42 = vunpack.c.h.bf16 %v2116_v36  ;;  %v1760_v43 = vunpack.c.l.bf16 %v2108_v32  ;;  %v2098_v53 = vld [vmem:[#allocation2 + $0x8] sm:$0xff]   ;;  %v2860_v57 = vld [vmem:[%s3132_s1 + $0x18] sm:$0xff]  ;;  %v2105_v0 = vld [vmem:[#allocation2 + $0x40] sm:$0xff]  }
  0x45   :  { %2453 = vmatpush3.msra.mxu1 %v1808_v9  ;;  %2199 = vmatpush3.msra.mxu0 %v1741_v13  ;;  %v1728_v46 = vunpack.c.l.bf16 %v2100_v35  ;;  %v1792_v47 = vunpack.c.l.bf16 %v2116_v36  ;;  %v1757_v48 = vunpack.c.h.bf16 %v2107_v41  ;;  %v1725_v50 = vunpack.c.h.bf16 %v2099_v44  ;;  %v2114_v55 = vld [vmem:[#allocation2 + $0x88] sm:$0xff]   ;;  %v2878_v4 = vld [vmem:[%s3132_s1 + $0x10] sm:$0xff]  ;;  %v1715_v6 = vld [vmem:[#allocation2] sm:$0xff]  }
  0x46   :  { %2454 = vmatprep.subr.mxu1 %v1805_v15  ;;  %2200 = vmatprep.subr.mxu0 %v1772_v16  ;;  %v1789_v52 = vunpack.c.h.bf16 %v2115_v45  ;;  %v1756_v54 = vunpack.c.l.bf16 %v2107_v41  ;;  %v1724_v58 = vunpack.c.l.bf16 %v2099_v44  ;;  %v1788_v59 = vunpack.c.l.bf16 %v2115_v45  ;;  %v2867_v62 = vld [vmem:[%s3132_s1 + $0x8] sm:$0xff]  ;;  %v2113_v9 = vld [vmem:[#allocation2 + $0x80] sm:$0xff]  }
  0x47   :  { %2455 = vmatpush3.msra.mxu1 %v1805_v15  ;;  %2201 = vmatpush3.msra.mxu0 %v1740_v19  ;;  %v1753_v60 = vunpack.c.h.bf16 %v2106_v51  ;;  %v2862_v61 = vshrl.u32 %v113_v49, 7  ;;  %v1721_v63 = vunpack.c.h.bf16 %v2098_v53  ;;  %v1785_v1 = vunpack.c.h.bf16 %v2114_v55 }
  0x48   :  { %2456 = vmatprep.subr.mxu1 %v1804_v20  ;;  %2202 = vmatprep.subr.mxu0 %v1769_v21  ;;  %v2870_v2 = vmax.f32 %v2855_v56, 0.0  ;;  %v2873_v3 = vmax.f32 %v2860_v57, 0.0  ;;  %v1752_v5 = vunpack.c.l.bf16 %v2106_v51  ;;  %v1720_v7 = vunpack.c.l.bf16 %v2098_v53  ;;  %v2134_v51 = vld [vmem:[#allocation5 + $0x70] sm:$0xff]   ;;  %v1372_v53 = vld [vmem:[#allocation10 + $0x80] sm:$0xff] }
  0x49   :  { %2457 = vmatpush3.msra.mxu1 %v1804_v20  ;;  %2203 = vmatpush3.msra.mxu0 %v1737_v22  ;;  %v1784_v8 = vunpack.c.l.bf16 %v2114_v55  ;;  %v2881_v10 = vmax.f32 %v2867_v62, 0.0  ;;  %v1749_v11 = vunpack.c.h.bf16 %v2105_v0  ;;  %v115_v12 = vadd.s32 8, %v2862_v61 }
  0x4a   :  { %2458 = vmatprep.subr.mxu1 %v1801_v24  ;;  %2204 = vmatprep.subr.mxu0 %v1768_v25  ;;  %v2885_v13 = vmax.f32 %v2878_v4, 0.0  ;;  %v1717_v14 = vunpack.c.h.bf16 %v1715_v6  ;;  %v118_v15 = vand.u32 15, %v2862_v61  ;;  %v530_v16 = vrot.slane %v2870_v2, 7 }
  0x4b   :  { %2459 = vmatpush3.msra.mxu1 %v1801_v24  ;;  %2205 = vmatpush3.msra.mxu0 %v1736_v28  ;;  %v533_v17 = vrot.slane %v2873_v3, 7  ;;  %v1748_v18 = vunpack.c.l.bf16 %v2105_v0  ;;  %vm534_vm0 = vcmp.lt.s32.totalorder %v2862_v61, 1  ;;  %v1781_v19 = vunpack.c.h.bf16 %v2113_v9  ;;  %v2143_v24 = vld [vmem:[#allocation5 + $0xb8] sm:$0xff]  }
  0x4c   :  { %2460 = vmatprep.subr.mxu1 %v1800_v29  ;;  %2206 = vmatprep.subr.mxu0 %v1765_v30  ;;  %vm547_vm1 = vcmp.lt.s32.totalorder %v2862_v61, 7  ;;  %v1716_v20 = vunpack.c.l.bf16 %v1715_v6  ;;  %v543_v21 = vrot.slane %v2870_v2, 1  ;;  %v544_v22 = vrot.slane %v2881_v10, 1 }
  0x4d   :  { %2461 = vmatpush3.msra.mxu1 %v1800_v29  ;;  %2207 = vmatpush3.msra.mxu0 %v1733_v31  ;;  %v116_v23 = vadd.s32 16, %v2862_v61  ;;  %v1780_v25 = vunpack.c.l.bf16 %v2113_v9  ;;  %v119_v26 = vand.u32 15, %v115_v12  ;;  %v545_v27 = vrot.slane %v2885_v13, 1  ;;  %v2135_v29 = vld [vmem:[#allocation5 + $0x78] sm:$0xff]   ;;  %v1381_v31 = vld [vmem:[#allocation10 + $0xc8] sm:$0xff] }
  0x4e   :  { %2462 = vmatprep.subr.mxu1 %v1797_v33  ;;  %2208 = vmatprep.subr.mxu0 %v1764_v34  ;;  %v117_v28 = vadd.s32 24, %v2862_v61  ;;  %v538_v30 = vsel %vm534_vm0, %v533_v17, %v530_v16  ;;  %vm2902_vm2 = vcmp.ne.s32.totalorder %v118_v15, 0  ;;  %v531_v32 = vrot.slane %v2881_v10, 7 }
  0x4f   :  { %2463 = vmatpush3.msra.mxu1 %v1797_v33  ;;  %2209 = vmatpush3.msra.mxu0 %v1732_v37  ;;  %v546_v33 = vrot.slane %v2873_v3, 1  ;;  %v1905_v34 = vunpack.c.h.bf16 %v2143_v24  ;;  %v550_v35 = vsel %vm547_vm1, %v543_v21, %v544_v22  ;;  %v1873_v36 = vunpack.c.h.bf16 %v2135_v29  ;;  %v2127_v37 = vld [vmem:[#allocation5 + $0x38] sm:$0xff]  }
  0x50   :  { %2464 = vmatprep.subr.mxu1 %v1796_v38  ;;  %2210 = vmatprep.subr.mxu0 %v1761_v39  ;;  %vm2914_vm3 = vcmp.ne.s32.totalorder %v119_v26, 15  ;;  %v537_v41 = vsel %vm534_vm0, %v530_v16, %v531_v32  ;;  %v1904_v45 = vunpack.c.l.bf16 %v2143_v24  ;;  %v1840_v55 = vunpack.c.l.bf16 %v2127_v37  ;;  %v2132_v16 = vld [vmem:[#allocation5 + $0x60] sm:$0xff]   ;;  %v2138_v26 = vld [vmem:[#allocation5 + $0x90] sm:$0xff]   ;;  %v1385_v39 = vld [vmem:[#allocation10 + $0xe8] sm:$0xff] }
  0x51   :  { %2465 = vmatpush3.msra.mxu1 %v1796_v38  ;;  %2211 = vmatpush3.msra.mxu0 %v1729_v40  ;;  %v549_v38 = vsel %vm547_vm1, %v544_v22, %v545_v27  ;;  %v121_v40 = vand.u32 15, %v117_v28  ;;  %v548_v44 = vsel %vm547_vm1, %v545_v27, %v546_v33  ;;  %v551_v49 = vsel %vm547_vm1, %v546_v33, %v543_v21 }
  0x52   :  { %2466 = vmatprep.subr.mxu1 %v1793_v42  ;;  %2212 = vmatprep.subr.mxu0 %v1760_v43  ;;  %v532_v43 = vrot.slane %v2885_v13, 7  ;;  %v1860_v22 = vunpack.c.l.bf16 %v2132_v16  ;;  %v1885_v28 = vunpack.c.h.bf16 %v2138_v26  ;;  %v1884_v33 = vunpack.c.l.bf16 %v2138_v26 }
  0x53   :  { %2467 = vmatpush3.msra.mxu1 %v1793_v42  ;;  %2213 = vmatpush3.msra.mxu0 %v1728_v46  ;;  %v120_v42 = vand.u32 15, %v116_v23  ;;  %v2142_v46 = vld [vmem:[#allocation5 + $0xb0] sm:$0xff]   ;;  %vm2928_vm4 = vcmp.ne.s32.totalorder %v121_v40, 15 }
  0x54   :  { %2468 = vmatprep.subr.mxu1 %v1792_v47  ;;  %2214 = vmatprep.subr.mxu0 %v1757_v48  ;;  %v1872_v48 = vunpack.c.l.bf16 %v2135_v29  ;;  %v535_v0 = vsel %vm534_vm0, %v532_v43, %v533_v17  ;;  %v2139_v17 = vld [vmem:[#allocation5 + $0x98] sm:$0xff]   ;;  %v2122_v40 = vld [vmem:[#allocation5 + $0x10] sm:$0xff]  }
  0x55   :  { %2469 = vmatpush3.msra.mxu1 %v1792_v47  ;;  %2215 = vmatpush3.msra.mxu0 %v1725_v50  ;;  %v1841_v47 = vunpack.c.h.bf16 %v2127_v37  ;;  %vm2935_vm5 = vcmp.ne.s32.totalorder %v120_v42, 0  ;;  %v1888_v23 = vunpack.c.l.bf16 %v2139_v17  ;;  %v2123_v29 = vld [vmem:[#allocation5 + $0x18] sm:$0xff]  }
  0x56   :  { %2470 = vmatprep.subr.mxu1 %v1789_v52  ;;  %2216 = vmatprep.subr.mxu0 %v1756_v54  ;;  %v1901_v54 = vunpack.c.h.bf16 %v2142_v46  ;;  %v1379_v50 = vld [vmem:[#allocation10 + $0xb8] sm:$0xff] }
  0x57   :  { %2471 = vmatpush3.msra.mxu1 %v1789_v52  ;;  %2217 = vmatpush3.msra.mxu0 %v1724_v58  ;;  %v536_v52 = vsel %vm534_vm0, %v531_v32, %v532_v43  ;;  %v2141_v58 = vld [vmem:[#allocation5 + $0xa8] sm:$0xff]  }
  0x58   :  { %2472 = vmatprep.subr.mxu1 %v1788_v59  ;;  %2218 = vmatprep.subr.mxu0 %v1753_v60  ;;  %v1900_v60 = vunpack.c.l.bf16 %v2142_v46  ;;  %v1896_v6 = vunpack.c.l.bf16 %v2141_v58  ;;  %v2136_v46 = vld [vmem:[#allocation5 + $0x80] sm:$0xff]  }
  0x59   :  { %2473 = vmatpush3.msra.mxu1 %v1788_v59  ;;  %2219 = vmatpush3.msra.mxu0 %v1721_v63  ;;  %v2126_v59 = vld [vmem:[#allocation5 + $0x30] sm:$0xff]   ;;  %v1869_v63 = vunpack.c.h.bf16 %v2134_v51 }
  0x5a   :  { %2474 = vmatprep.subr.mxu1 %v1785_v1  ;;  %2220 = vmatprep.subr.mxu0 %v1752_v5  ;;  %v1868_v5 = vunpack.c.l.bf16 %v2134_v51 }
  0x5b   :  { %2475 = vmatpush3.msra.mxu1 %v1785_v1  ;;  %2221 = vmatpush3.msra.mxu0 %v1720_v7  ;;  %v1897_v1 = vunpack.c.h.bf16 %v2141_v58  ;;  %v1836_v7 = vunpack.c.l.bf16 %v2126_v59  ;;  %v2128_v58 = vld [vmem:[#allocation5 + $0x40] sm:$0xff]  }
  0x5c   :  { %2476 = vmatprep.subr.mxu1 %v1784_v8  ;;  %2222 = vmatprep.subr.mxu0 %v1749_v11  ;;  %v2125_v11 = vld [vmem:[#allocation5 + $0x28] sm:$0xff]  }
  0x5d   :  { %626 = vmatprep.mubr.f32.mxu0 %v2870_v2  ;;  %2223 = vmatpush3.msra.mxu0 %v1717_v14  ;;  %v1837_v2 = vunpack.c.h.bf16 %v2126_v59  ;;  %v1833_v12 = vunpack.c.h.bf16 %v2125_v11  ;;  %v1832_v15 = vunpack.c.l.bf16 %v2125_v11  ;;  %v1845_v59 = vunpack.c.h.bf16 %v2128_v58 }
  0x5e   :  { %2477 = vmatpush3.msra.mxu1 %v1784_v8  ;;  %2224 = vmatprep.subr.mxu0 %v1748_v18  ;;  %v2133_v8 = vld [vmem:[#allocation5 + $0x68] sm:$0xff]   ;;  %v1861_v18 = vunpack.c.h.bf16 %v2132_v16 }
  0x5f   :  { %2478 = vmatprep.subr.mxu1 %v1781_v19  ;;  %2225 = vmatpush3.msra.mxu0 %v1716_v20  ;;  %v1865_v9 = vunpack.c.h.bf16 %v2133_v8  ;;  %v2124_v20 = vld [vmem:[#allocation5 + $0x20] sm:$0xff]  }
  0x60   :  { %2479 = vmatpush3.msra.mxu1 %v1781_v19  ;;  %1672 = vmatmul.mubr.msk.f32.vlgmr.msra.gmra.mxu0 %vm2902_vm2, %v538_v30  ;;  %v1889_v19 = vunpack.c.h.bf16 %v2139_v17  ;;  %v1829_v21 = vunpack.c.h.bf16 %v2124_v20  ;;  %v1828_v24 = vunpack.c.l.bf16 %v2124_v20  ;;  %v1825_v30 = vunpack.c.h.bf16 %v2123_v29 }
  0x61   :  { %2480 = vmatprep.subr.mxu1 %v1780_v25  ;;  %631 = vmatprep.mubr.f32.mxu0 %v2881_v10 }
  0x62   :  { %2481 = vmatpush3.msra.mxu1 %v1780_v25  ;;  %2482 = vmatprep.mubr.f32.mxu1 %v550_v35  ;;  %v2131_v25 = vld [vmem:[#allocation5 + $0x58] sm:$0xff]   ;;  %v2130_v35 = vld [vmem:[#allocation5 + $0x50] sm:$0xff]  }
  0x63   :  { %2488 = vmatprep.subr.mxu1 %v1905_v34  ;;  %2483 = vmatmul.mubr.msk.f32.vlgmr.msra.gmra.mxu1 %vm2914_vm3, %v549_v38  ;;  %v1857_v27 = vunpack.c.h.bf16 %v2131_v25  ;;  %v1856_v32 = vunpack.c.l.bf16 %v2131_v25  ;;  %v1853_v37 = vunpack.c.h.bf16 %v2130_v35  ;;  %v1852_v42 = vunpack.c.l.bf16 %v2130_v35 }
  0x64   :  { %2258 = vmatprep.subr.mxu0 %v1873_v36  ;;  %632 = vmatmul.mubr.f32.gmra.mxu0 %v537_v41  ;;  %v2137_v36 = vld [vmem:[#allocation5 + $0x88] sm:$0xff]   ;;  %v1821_v41 = vunpack.c.h.bf16 %v2122_v40 }
  0x65   :  { %2485 = vmatprep.mubr.f32.mxu1 %v548_v44  ;;  %636 = vmatprep.mubr.f32.mxu0 %v2885_v13  ;;  %v1864_v13 = vunpack.c.l.bf16 %v2133_v8  ;;  %v1881_v38 = vunpack.c.h.bf16 %v2137_v36  ;;  %v1880_v43 = vunpack.c.l.bf16 %v2137_v36  ;;  %v1820_v44 = vunpack.c.l.bf16 %v2122_v40  ;;  %v1670_v8 = vld [vmem:[%s3134_s3] ss:$0 sm:$0xff] }
  0x66   :  { %2489 = vmatpush3.msra.mxu1 %v1905_v34  ;;  %2259 = vmatpush3.msra.mxu0 %v1841_v47  ;;  %v1824_v34 = vunpack.c.l.bf16 %v2123_v29 }
  0x67   :  { %2490 = vmatprep.subr.mxu1 %v1904_v45  ;;  %2486 = vmatmul.mubr.msk.f32.gmra.mxu1 %vm2928_vm4, %v551_v49  ;;  %v2121_v49 = vld [vmem:[#allocation5 + $0x8] sm:$0xff]  }
  0x68   :  { %2260 = vmatprep.subr.mxu0 %v1872_v48  ;;  %1674 = vmatmul.mubr.msk.f32.gmra.mxu0 %vm2935_vm5, %v536_v52  ;;  %v1877_v48 = vunpack.c.h.bf16 %v2136_v46  ;;  %v1817_v51 = vunpack.c.h.bf16 %v2121_v49 }
  0x69   :  { %2491 = vmatpush3.msra.mxu1 %v1904_v45  ;;  %641 = vmatprep.mubr.f32.mxu0 %v2873_v3  ;;  %v2140_v3 = vld [vmem:[#allocation5 + $0xa0] sm:$0xff]   ;;  %v2129_v45 = vld [vmem:[#allocation5 + $0x48] sm:$0xff]  }
  0x6a   :  { %2492 = vmatprep.subr.mxu1 %v1901_v54  ;;  %2261 = vmatpush3.msra.mxu0 %v1840_v55  ;;  %v1893_v10 = vunpack.c.h.bf16 %v2140_v3  ;;  %v1892_v14 = vunpack.c.l.bf16 %v2140_v3  ;;  %v1849_v47 = vunpack.c.h.bf16 %v2129_v45  ;;  %v1848_v52 = vunpack.c.l.bf16 %v2129_v45 }
  0x6b   :  { %2493 = vmatpush3.msra.mxu1 %v1901_v54  ;;  %2262 = vmatprep.subr.mxu0 %v1869_v63  ;;  %v1876_v54 = vunpack.c.l.bf16 %v2136_v46  ;;  %v1816_v55 = vunpack.c.l.bf16 %v2121_v49 }
  0x6c   :  { %2494 = vmatprep.subr.mxu1 %v1900_v60  ;;  %642 = vmatmul.mubr.f32.gmra.mxu0 %v535_v0  ;;  %v1844_v0 = vunpack.c.l.bf16 %v2128_v58  ;;  %v2165_v58 = vld [vmem:[#allocation7 + $0xb0] sm:$0xff]  }
  0x6d   :  { %2495 = vmatpush3.msra.mxu1 %v1900_v60  ;;  %2263 = vmatpush3.msra.mxu0 %v1837_v2  ;;  %v1811_v60 = vld [vmem:[#allocation5] sm:$0xff]   ;;  %v2948_v2 = vld [vmem:[#allocation7 + $0xb8] sm:$0xff]  }
  0x6e   :  { %2496 = vmatprep.subr.mxu1 %v1897_v1  ;;  %2264 = vmatprep.subr.mxu0 %v1868_v5  ;;  %v1813_v63 = vunpack.c.h.bf16 %v1811_v60  ;;  %v2001_v5 = vunpack.c.h.bf16 %v2948_v2 }
  0x6f   :  { %2497 = vmatpush3.msra.mxu1 %v1897_v1  ;;  %2265 = vmatpush3.msra.mxu0 %v1836_v7  ;;  %v1812_v1 = vunpack.c.l.bf16 %v1811_v60  ;;  %v1997_v60 = vunpack.c.h.bf16 %v2165_v58 }
  0x70   :  { %2498 = vmatprep.subr.mxu1 %v1896_v6  ;;  %2266 = vmatprep.subr.mxu0 %v1865_v9 }
  0x71   :  { %2499 = vmatpush3.msra.mxu1 %v1896_v6  ;;  %2267 = vmatpush3.msra.mxu0 %v1833_v12 }
  0x72   :  { %2500 = vmatprep.subr.mxu1 %v1893_v10  ;;  %2268 = vmatprep.subr.mxu0 %v1864_v13 }
  0x73   :  { %2501 = vmatpush3.msra.mxu1 %v1893_v10  ;;  %2269 = vmatpush3.msra.mxu0 %v1832_v15 }
  0x74   :  { %2502 = vmatprep.subr.mxu1 %v1892_v14  ;;  %2270 = vmatprep.subr.mxu0 %v1861_v18 }
  0x75   :  { %2503 = vmatpush3.msra.mxu1 %v1892_v14  ;;  %2271 = vmatpush3.msra.mxu0 %v1829_v21 }
  0x76   :  { %2504 = vmatprep.subr.mxu1 %v1889_v19  ;;  %2272 = vmatprep.subr.mxu0 %v1860_v22 }
  0x77   :  { %2505 = vmatpush3.msra.mxu1 %v1889_v19  ;;  %2273 = vmatpush3.msra.mxu0 %v1828_v24 }
  0x78   :  { %2506 = vmatprep.subr.mxu1 %v1888_v23  ;;  %2274 = vmatprep.subr.mxu0 %v1857_v27 }
  0x79   :  { %2507 = vmatpush3.msra.mxu1 %v1888_v23  ;;  %2275 = vmatpush3.msra.mxu0 %v1825_v30 }
  0x7a   :  { %2508 = vmatprep.subr.mxu1 %v1885_v28  ;;  %2276 = vmatprep.subr.mxu0 %v1856_v32 }
  0x7b   :  { %2509 = vmatpush3.msra.mxu1 %v1885_v28  ;;  %2277 = vmatpush3.msra.mxu0 %v1824_v34 }
  0x7c   :  { %2510 = vmatprep.subr.mxu1 %v1884_v33  ;;  %2278 = vmatprep.subr.mxu0 %v1853_v37 }
  0x7d   :  { %2511 = vmatpush3.msra.mxu1 %v1884_v33  ;;  %2279 = vmatpush3.msra.mxu0 %v1821_v41 }
  0x7e   :  { %2512 = vmatprep.subr.mxu1 %v1881_v38  ;;  %2280 = vmatprep.subr.mxu0 %v1852_v42 }
  0x7f   :  { %2513 = vmatpush3.msra.mxu1 %v1881_v38  ;;  %2281 = vmatpush3.msra.mxu0 %v1820_v44 }
  0x80   :  { %2514 = vmatprep.subr.mxu1 %v1880_v43  ;;  %2282 = vmatprep.subr.mxu0 %v1849_v47 }
  0x81   :  { %2515 = vmatpush3.msra.mxu1 %v1880_v43  ;;  %2283 = vmatpush3.msra.mxu0 %v1817_v51 }
  0x82   :  { %2516 = vmatprep.subr.mxu1 %v1877_v48  ;;  %2284 = vmatprep.subr.mxu0 %v1848_v52 }
  0x83   :  { %2517 = vmatpush3.msra.mxu1 %v1877_v48  ;;  %2285 = vmatpush3.msra.mxu0 %v1816_v55  ;;  %v2158_v55 = vld [vmem:[#allocation7 + $0x78] sm:$0xff]  }
  0x84   :  { %2518 = vmatprep.subr.mxu1 %v1876_v54  ;;  %2286 = vmatprep.subr.mxu0 %v1845_v59  ;;  %v1969_v59 = vunpack.c.h.bf16 %v2158_v55 }
  0x85   :  { %2519 = vmatpush3.msra.mxu1 %v1876_v54  ;;  %2287 = vmatpush3.msra.mxu0 %v1813_v63  ;;  %v2000_v54 = vunpack.c.l.bf16 %v2948_v2  ;;  %v2150_v63 = vld [vmem:[#allocation7 + $0x38] sm:$0xff]  }
  0x86   :  { %2288 = vmatprep.subr.mxu0 %v1844_v0  ;;  %2526 = vmatprep.subr.mxu1 %v2001_v5  ;;  %v1937_v0 = vunpack.c.h.bf16 %v2150_v63 }
  0x87   :  { %2289 = vmatpush3.msra.mxu0 %v1812_v1  ;;  %v1968_v1 = vunpack.c.l.bf16 %v2158_v55  ;;  %v2159_v55 = vld [vmem:[#allocation7 + $0x80] sm:$0xff]  }
  0x88   :  { %2322 = vmatprep.subr.mxu0 %v1969_v59  ;;  %v1973_v59 = vunpack.c.h.bf16 %v2159_v55 }
 0x120   :  { %v2226_v6 = vpop.f32.mrf.mxu0 }
 0x122   :  { %v2227_v7 = vpop.f32.mrf.mxu0 }
 0x123   :  { %v2228_v3 = vadd.f32 %v2227_v7, %v2226_v6  ;;  %v2484_v9 = vpop.f32.mrf.mxu1  ;;  %v1936_v6 = vunpack.c.l.bf16 %v2150_v63  ;;  %v2157_v7 = vld [vmem:[#allocation7 + $0x70] sm:$0xff]  }
 0x124   :  { %v2229_v10 = vpop.f32.mrf.mxu0  ;;  %v1965_v2 = vunpack.c.h.bf16 %v2157_v7 }
 0x125   :  { %v629_v11 = vadd.f32 %v2228_v3, %v1670_v8  ;;  %v713_v12 = vpop.f32.mrf.mxu1 }
 0x126   :  { %v2230_v13 = vpop.f32.mrf.mxu0 }
 0x127   :  { %v2231_v14 = vadd.f32 %v2230_v13, %v2229_v10  ;;  %v714_v15 = vadd.f32 %v713_v12, %v629_v11  ;;  %v2487_v17 = vpop.f32.mrf.mxu1  ;;  %v1964_v11 = vunpack.c.l.bf16 %v2157_v7 }
 0x128   :  { %v2232_v16 = vpop.f32.mrf.mxu0 }
 0x129   :  { %v634_v18 = vadd.f32 %v2231_v14, %v1670_v8  ;;  %v732_v19 = vmax.f32 %v714_v15, 0.0  ;;  %v723_v24 = vpop.f32.mrf.mxu1  ;;  %v2156_v14 = vld [vmem:[#allocation7 + $0x68] sm:$0xff]   ;;  %v2163_v15 = vld [vmem:[#allocation7 + $0xa0] sm:$0xff]  }
 0x12a   :  { %v2233_v20 = vpop.f32.mrf.mxu0 }
 0x12b   :  { %v719_v21 = vadd.f32 %v2484_v9, %v634_v18  ;;  %v2234_v22 = vadd.f32 %v2233_v20, %v2232_v16  ;;  %830 = vmatprep.mubr.f32.mxu0 %v732_v19  ;;  %v748_v28 = vrot.slane %v732_v19, 1  ;;  %v736_v41 = vrot.slane %v732_v19, 7  ;;  %v2149_v9 = vld [vmem:[#allocation7 + $0x30] sm:$0xff]   ;;  %v2148_v18 = vld [vmem:[#allocation7 + $0x28] sm:$0xff]  }
 0x12c   :  { %v2235_v23 = vpop.f32.mrf.mxu0  ;;  %v1933_v10 = vunpack.c.h.bf16 %v2149_v9  ;;  %v1932_v13 = vunpack.c.l.bf16 %v2149_v9  ;;  %v1961_v16 = vunpack.c.h.bf16 %v2156_v14  ;;  %v1929_v19 = vunpack.c.h.bf16 %v2148_v18 }
 0x12d   :  { %v733_v25 = vmax.f32 %v719_v21, 0.0  ;;  %v639_v26 = vadd.f32 %v2234_v22, %v1670_v8  ;;  %v1960_v20 = vunpack.c.l.bf16 %v2156_v14  ;;  %v1988_v21 = vunpack.c.l.bf16 %v2163_v15 }
 0x12e   :  { %v2236_v27 = vpop.f32.mrf.mxu0  ;;  %v1928_v22 = vunpack.c.l.bf16 %v2148_v18 }
 0x12f   :  { %v2237_v29 = vadd.f32 %v2236_v27, %v2235_v23  ;;  %v724_v30 = vadd.f32 %v723_v24, %v639_v26  ;;  %v749_v32 = vrot.slane %v733_v25, 1  ;;  %v737_v47 = vrot.slane %v733_v25, 7  ;;  %v2155_v23 = vld [vmem:[#allocation7 + $0x60] sm:$0xff]   ;;  %v2162_v24 = vld [vmem:[#allocation7 + $0x98] sm:$0xff]  }
 0x130   :  { %v1985_v26 = vunpack.c.h.bf16 %v2162_v24  ;;  %v2147_v27 = vld [vmem:[#allocation7 + $0x20] sm:$0xff]  }
 0x131   :  { %v644_v33 = vadd.f32 %v2237_v29, %v1670_v8  ;;  %v734_v34 = vmax.f32 %v724_v30, 0.0  ;;  %v754_v35 = vsel %vm547_vm1, %v748_v28, %v749_v32  ;;  %v742_v49 = vsel %vm534_vm0, %v736_v41, %v737_v47  ;;  %v2164_v8 = vld [vmem:[#allocation7 + $0xa8] sm:$0xff]  }
 0x132   :  { %2520 = vmatprep.mubr.f32.mxu1 %v754_v35  ;;  %v1993_v3 = vunpack.c.h.bf16 %v2164_v8  ;;  %v1992_v12 = vunpack.c.l.bf16 %v2164_v8  ;;  %v1956_v29 = vunpack.c.l.bf16 %v2155_v23  ;;  %v1984_v30 = vunpack.c.l.bf16 %v2162_v24  ;;  %v1907_v8 = vld [vmem:[#allocation7] sm:$0xff]  }
 0x133   :  { %v729_v36 = vadd.f32 %v2487_v17, %v644_v33  ;;  %v750_v37 = vrot.slane %v734_v34, 1  ;;  %v738_v48 = vrot.slane %v734_v34, 7  ;;  %v1989_v17 = vunpack.c.h.bf16 %v2163_v15  ;;  %v2154_v33 = vld [vmem:[#allocation7 + $0x58] sm:$0xff]  }
 0x134   :  { %v1953_v35 = vunpack.c.h.bf16 %v2154_v33  ;;  %v1908_v9 = vunpack.c.l.bf16 %v1907_v8 }
 0x135   :  { %v735_v38 = vmax.f32 %v729_v36, 0.0  ;;  %v753_v40 = vsel %vm547_vm1, %v749_v32, %v750_v37  ;;  %v741_v51 = vsel %vm534_vm0, %v737_v47, %v738_v48  ;;  %v1924_v32 = vunpack.c.l.bf16 %v2147_v27  ;;  %v2145_v47 = vld [vmem:[#allocation7 + $0x10] sm:$0xff]  }
 0x136   :  { %2521 = vmatmul.mubr.msk.f32.vlgmr.msra.gmra.mxu1 %vm2914_vm3, %v753_v40  ;;  %v1952_v40 = vunpack.c.l.bf16 %v2154_v33 }
 0x137   :  { %v739_v42 = vrot.slane %v735_v38, 7  ;;  %v751_v43 = vrot.slane %v735_v38, 1  ;;  %2527 = vmatpush3.msra.mxu1 %v2001_v5  ;;  %v1996_v5 = vunpack.c.l.bf16 %v2165_v58 }
 0x138   :  { %2528 = vmatprep.subr.mxu1 %v2000_v54 }
 0x139   :  { %v743_v44 = vsel %vm534_vm0, %v739_v42, %v736_v41  ;;  %v752_v45 = vsel %vm547_vm1, %v750_v37, %v751_v43  ;;  %v755_v46 = vsel %vm547_vm1, %v751_v43, %v748_v28  ;;  %v740_v52 = vsel %vm534_vm0, %v738_v48, %v739_v42  ;;  %2529 = vmatpush3.msra.mxu1 %v2000_v54  ;;  %v2146_v37 = vld [vmem:[#allocation7 + $0x18] sm:$0xff]   ;;  %v2153_v43 = vld [vmem:[#allocation7 + $0x50] sm:$0xff]   ;;  %v2152_v54 = vld [vmem:[#allocation7 + $0x48] sm:$0xff]  }
 0x13a   :  { %1681 = vmatmul.mubr.msk.f32.vlgmr.msra.gmra.mxu0 %vm2902_vm2, %v743_v44  ;;  %2523 = vmatprep.mubr.f32.mxu1 %v752_v45  ;;  %v1925_v28 = vunpack.c.h.bf16 %v2147_v27  ;;  %v1920_v42 = vunpack.c.l.bf16 %v2146_v37  ;;  %v2160_v44 = vld [vmem:[#allocation7 + $0x88] sm:$0xff]   ;;  %v1949_v45 = vunpack.c.h.bf16 %v2153_v43  ;;  %v1917_v48 = vunpack.c.h.bf16 %v2145_v47 }
 0x13b   :  { %835 = vmatprep.mubr.f32.mxu0 %v733_v25  ;;  %2524 = vmatmul.mubr.msk.f32.gmra.mxu1 %vm2928_vm4, %v755_v46  ;;  %v1957_v25 = vunpack.c.h.bf16 %v2155_v23  ;;  %v1977_v46 = vunpack.c.h.bf16 %v2160_v44  ;;  %v1945_v58 = vunpack.c.h.bf16 %v2152_v54 }
 0x13c   :  { %2530 = vmatprep.subr.mxu1 %v1997_v60  ;;  %2323 = vmatpush3.msra.mxu0 %v1937_v0  ;;  %v1944_v0 = vunpack.c.l.bf16 %v2152_v54  ;;  %v521_v54 = vld [vmem:[%s3131_s0 + $0x18] sm:$0xff] }
 0x13d   :  { %2531 = vmatpush3.msra.mxu1 %v1997_v60  ;;  %2324 = vmatprep.subr.mxu0 %v1968_v1  ;;  %v2144_v60 = vld [vmem:[#allocation7 + $0x8] sm:$0xff]   ;;  %v1972_v1 = vunpack.c.l.bf16 %v2159_v55 }
 0x13e   :  { %836 = vmatmul.mubr.f32.gmra.mxu0 %v742_v49  ;;  %2532 = vmatprep.subr.mxu1 %v1996_v5  ;;  %v1948_v49 = vunpack.c.l.bf16 %v2153_v43  ;;  %v1913_v63 = vunpack.c.h.bf16 %v2144_v60 }
 0x13f   :  { %840 = vmatprep.mubr.f32.mxu0 %v734_v34  ;;  %2325 = vmatpush3.msra.mxu0 %v1936_v6  ;;  %v2161_v34 = vld [vmem:[#allocation7 + $0x90] sm:$0xff]   ;;  %v2151_v6 = vld [vmem:[#allocation7 + $0x40] sm:$0xff]  }
 0x140   :  { %2533 = vmatpush3.msra.mxu1 %v1996_v5  ;;  %2326 = vmatprep.subr.mxu0 %v1965_v2  ;;  %v1981_v36 = vunpack.c.h.bf16 %v2161_v34  ;;  %v1980_v41 = vunpack.c.l.bf16 %v2161_v34  ;;  %v1912_v5 = vunpack.c.l.bf16 %v2144_v60  ;;  %v1941_v7 = vunpack.c.h.bf16 %v2151_v6 }
 0x141   :  { %2534 = vmatprep.subr.mxu1 %v1993_v3  ;;  %2327 = vmatpush3.msra.mxu0 %v1933_v10  ;;  %v1909_v2 = vunpack.c.h.bf16 %v1907_v8  ;;  %v2979_v10 = vld [vmem:[#allocation8 + $0xb8] sm:$0xff]  }
 0x142   :  { %1683 = vmatmul.mubr.msk.f32.gmra.mxu0 %vm2935_vm5, %v741_v51  ;;  %2535 = vmatpush3.msra.mxu1 %v1993_v3  ;;  %v1976_v51 = vunpack.c.l.bf16 %v2160_v44  ;;  %v1940_v3 = vunpack.c.l.bf16 %v2151_v6  ;;  %v2173_v6 = vld [vmem:[#allocation8 + $0x38] sm:$0xff]  }
 0x143   :  { %845 = vmatprep.mubr.f32.mxu0 %v735_v38  ;;  %2328 = vmatprep.subr.mxu0 %v1964_v11  ;;  %v1921_v38 = vunpack.c.h.bf16 %v2146_v37  ;;  %v2981_v11 = vld [vmem:[#allocation8 + $0x78] sm:$0xff]  }
 0x144   :  { %2536 = vmatprep.subr.mxu1 %v1992_v12  ;;  %2329 = vmatpush3.msra.mxu0 %v1932_v13  ;;  %v2065_v13 = vunpack.c.h.bf16 %v2981_v11 }
 0x145   :  { %2537 = vmatpush3.msra.mxu1 %v1992_v12  ;;  %2330 = vmatprep.subr.mxu0 %v1961_v16  ;;  %v2097_v12 = vunpack.c.h.bf16 %v2979_v10  ;;  %v1679_v16 = vld [vmem:[%s3136_s5] ss:$0 sm:$0xff] }
 0x146   :  { %846 = vmatmul.mubr.f32.gmra.mxu0 %v740_v52  ;;  %2538 = vmatprep.subr.mxu1 %v1989_v17  ;;  %v1916_v52 = vunpack.c.l.bf16 %v2145_v47 }
 0x147   :  { %2331 = vmatpush3.msra.mxu0 %v1929_v19  ;;  %2539 = vmatpush3.msra.mxu1 %v1989_v17 }
 0x148   :  { %2332 = vmatprep.subr.mxu0 %v1960_v20  ;;  %2540 = vmatprep.subr.mxu1 %v1988_v21 }
 0x149   :  { %2333 = vmatpush3.msra.mxu0 %v1928_v22  ;;  %2541 = vmatpush3.msra.mxu1 %v1988_v21 }
 0x14a   :  { %2334 = vmatprep.subr.mxu0 %v1957_v25  ;;  %2542 = vmatprep.subr.mxu1 %v1985_v26 }
 0x14b   :  { %2335 = vmatpush3.msra.mxu0 %v1925_v28  ;;  %2543 = vmatpush3.msra.mxu1 %v1985_v26  ;;  %v518_v26 = vld [vmem:[%s3131_s0] sm:$0xff] }
 0x14c   :  { %2336 = vmatprep.subr.mxu0 %v1956_v29  ;;  %2544 = vmatprep.subr.mxu1 %v1984_v30 }
 0x14d   :  { %2337 = vmatpush3.msra.mxu0 %v1924_v32  ;;  %2545 = vmatpush3.msra.mxu1 %v1984_v30 }
 0x14e   :  { %2338 = vmatprep.subr.mxu0 %v1953_v35  ;;  %2546 = vmatprep.subr.mxu1 %v1981_v36  ;;  %v519_v35 = vld [vmem:[%s3131_s0 + $0x8] sm:$0xff] }
 0x14f   :  { %2339 = vmatpush3.msra.mxu0 %v1921_v38  ;;  %2547 = vmatpush3.msra.mxu1 %v1981_v36 }
 0x150   :  { %2340 = vmatprep.subr.mxu0 %v1952_v40  ;;  %2548 = vmatprep.subr.mxu1 %v1980_v41 }
 0x151   :  { %2341 = vmatpush3.msra.mxu0 %v1920_v42  ;;  %2549 = vmatpush3.msra.mxu1 %v1980_v41 }
 0x152   :  { %2342 = vmatprep.subr.mxu0 %v1949_v45  ;;  %2550 = vmatprep.subr.mxu1 %v1977_v46  ;;  %v520_v45 = vld [vmem:[%s3131_s0 + $0x10] sm:$0xff] }
 0x153   :  { %2343 = vmatpush3.msra.mxu0 %v1917_v48  ;;  %2551 = vmatpush3.msra.mxu1 %v1977_v46 }
 0x154   :  { %2344 = vmatprep.subr.mxu0 %v1948_v49  ;;  %2552 = vmatprep.subr.mxu1 %v1976_v51 }
 0x155   :  { %2345 = vmatpush3.msra.mxu0 %v1916_v52  ;;  %2553 = vmatpush3.msra.mxu1 %v1976_v51 }
 0x156   :  { %2346 = vmatprep.subr.mxu0 %v1945_v58  ;;  %2554 = vmatprep.subr.mxu1 %v1973_v59 }
 0x157   :  { %2555 = vmatpush3.msra.mxu1 %v1973_v59  ;;  %2347 = vmatpush3.msra.mxu0 %v1913_v63  ;;  %v2096_v63 = vunpack.c.l.bf16 %v2979_v10 }
 0x158   :  { %2348 = vmatprep.subr.mxu0 %v1944_v0  ;;  %2556 = vmatprep.subr.mxu1 %v1972_v1 }
 0x159   :  { %2349 = vmatpush3.msra.mxu0 %v1912_v5  ;;  %2557 = vmatpush3.msra.mxu1 %v1972_v1  ;;  %v2188_v5 = vld [vmem:[#allocation8 + $0xb0] sm:$0xff]  }
 0x15a   :  { %2350 = vmatprep.subr.mxu0 %v1941_v7  ;;  %2564 = vmatprep.subr.mxu1 %v2097_v12 }
 0x15b   :  { %2351 = vmatpush3.msra.mxu0 %v1909_v2  ;;  %v2093_v2 = vunpack.c.h.bf16 %v2188_v5 }
 0x15c   :  { %2352 = vmatprep.subr.mxu0 %v1940_v3  ;;  %v2033_v3 = vunpack.c.h.bf16 %v2173_v6 }
 0x15d   :  { %2353 = vmatpush3.msra.mxu0 %v1908_v9 }
 0x15e   :  { %2386 = vmatprep.subr.mxu0 %v2065_v13 }
 0x1f6   :  { %v2522_v15 = vpop.f32.mrf.mxu1 }
 0x1f8   :  { %v917_v21 = vpop.f32.mrf.mxu1 }
 0x1fa   :  { %v2290_v14 = vpop.f32.mrf.mxu0 }
 0x1fb   :  { %v2525_v29 = vpop.f32.mrf.mxu1 }
 0x1fc   :  { %v2291_v17 = vpop.f32.mrf.mxu0 }
 0x1fd   :  { %v2292_v18 = vadd.f32 %v2291_v17, %v2290_v14  ;;  %v927_v41 = vpop.f32.mrf.mxu1 }
 0x1fe   :  { %v2293_v19 = vpop.f32.mrf.mxu0 }
 0x1ff   :  { %v833_v20 = vadd.f32 %v2292_v18, %v1679_v16  ;;  %v2064_v18 = vunpack.c.l.bf16 %v2981_v11  ;;  %v2179_v11 = vld [vmem:[#allocation8 + $0x68] sm:$0xff]  }
 0x200   :  { %v2294_v22 = vpop.f32.mrf.mxu0 }
 0x201   :  { %v918_v23 = vadd.f32 %v917_v21, %v833_v20  ;;  %v2295_v24 = vadd.f32 %v2294_v22, %v2293_v19  ;;  %v2092_v19 = vunpack.c.l.bf16 %v2188_v5  ;;  %v2032_v20 = vunpack.c.l.bf16 %v2173_v6  ;;  %v2180_v21 = vld [vmem:[#allocation8 + $0x70] sm:$0xff]   ;;  %v2187_v22 = vld [vmem:[#allocation8 + $0xa8] sm:$0xff]  }
 0x202   :  { %v2296_v25 = vpop.f32.mrf.mxu0  ;;  %v2183_v5 = vld [vmem:[#allocation8 + $0x88] sm:$0xff]  }
 0x203   :  { %v936_v27 = vadd.f32 %v918_v23, %v2855_v56  ;;  %v838_v28 = vadd.f32 %v2295_v24, %v1679_v16  ;;  %v2061_v23 = vunpack.c.h.bf16 %v2180_v21  ;;  %v2089_v24 = vunpack.c.h.bf16 %v2187_v22 }
 0x204   :  { %v2297_v30 = vpop.f32.mrf.mxu0 }
 0x205   :  { %v923_v32 = vadd.f32 %v2522_v15, %v838_v28  ;;  %v2298_v33 = vadd.f32 %v2297_v30, %v2296_v25  ;;  %v2992_v34 = vadd.f32 %v936_v27, %v518_v26  ;;  %v2172_v25 = vld [vmem:[#allocation8 + $0x30] sm:$0xff]   ;;  %v2060_v27 = vunpack.c.l.bf16 %v2180_v21  ;;  %v2186_v30 = vld [vmem:[#allocation8 + $0xa0] sm:$0xff]  }
 0x206   :  { %v2299_v36 = vpop.f32.mrf.mxu0  ;;  %v2029_v26 = vunpack.c.h.bf16 %v2172_v25  ;;  %v2088_v28 = vunpack.c.l.bf16 %v2187_v22  ;;  %v2003_v22 = vld [vmem:[#allocation8] sm:$0xff]  }
 0x207   :  { %v937_v37 = vadd.f32 %v923_v32, %v2867_v62  ;;  %v843_v38 = vadd.f32 %v2298_v33, %v1679_v16  ;;  %v944_v40 = vmax.f32 %v2992_v34, 0.0  ;;  %v2057_v32 = vunpack.c.h.bf16 %v2179_v11 }
 0x208   :  { %v2300_v42 = vpop.f32.mrf.mxu0  ;;  %v2085_v33 = vunpack.c.h.bf16 %v2186_v30 }
 0x209   :  { %v2999_v56 = vadd.f32 %v937_v37, %v519_v35  ;;  %v928_v43 = vadd.f32 %v927_v41, %v843_v38  ;;  %v2301_v44 = vadd.f32 %v2300_v42, %v2299_v36  ;;  %1042 = vmatprep.mubr.f32.mxu0 %v944_v40  ;;  %v960_v51 = vrot.slane %v944_v40, 1  ;;  %v2171_v35 = vld [vmem:[#allocation8 + $0x28] sm:$0xff]   ;;  %v2178_v41 = vld [vmem:[#allocation8 + $0x60] sm:$0xff]   ;;  %v2185_v42 = vld [vmem:[#allocation8 + $0x98] sm:$0xff]  }
 0x20a   :  { %v2025_v36 = vunpack.c.h.bf16 %v2171_v35  ;;  %v2056_v37 = vunpack.c.l.bf16 %v2179_v11  ;;  %v2084_v38 = vunpack.c.l.bf16 %v2186_v30 }
 0x20b   :  { %v945_v46 = vmax.f32 %v2999_v56, 0.0  ;;  %v938_v47 = vadd.f32 %v928_v43, %v2878_v4  ;;  %v848_v48 = vadd.f32 %v2301_v44, %v1679_v16  ;;  %v2053_v43 = vunpack.c.h.bf16 %v2178_v41 }
 0x20c   :  { %v2081_v44 = vunpack.c.h.bf16 %v2185_v42 }
 0x20d   :  { %v3006_v62 = vadd.f32 %v938_v47, %v520_v45  ;;  %v933_v49 = vadd.f32 %v2525_v29, %v848_v48  ;;  %v961_v52 = vrot.slane %v945_v46, 1  ;;  %v949_v14 = vrot.slane %v945_v46, 7  ;;  %v2170_v45 = vld [vmem:[#allocation8 + $0x20] sm:$0xff]  }
 0x20e   :  { %v2028_v29 = vunpack.c.l.bf16 %v2172_v25  ;;  %v2052_v47 = vunpack.c.l.bf16 %v2178_v41  ;;  %v2080_v48 = vunpack.c.l.bf16 %v2185_v42  ;;  %v2004_v25 = vunpack.c.l.bf16 %v2003_v22 }
 0x20f   :  { %v946_v55 = vmax.f32 %v3006_v62, 0.0  ;;  %v939_v58 = vadd.f32 %v933_v49, %v2860_v57  ;;  %v966_v59 = vsel %vm547_vm1, %v960_v51, %v961_v52  ;;  %v948_v57 = vrot.slane %v944_v40, 7 }
 0x210   :  { %2558 = vmatprep.mubr.f32.mxu1 %v966_v59  ;;  %v2024_v40 = vunpack.c.l.bf16 %v2171_v35  ;;  %v2020_v49 = vunpack.c.l.bf16 %v2170_v45 }
 0x211   :  { %v3015_v60 = vadd.f32 %v939_v58, %v521_v54  ;;  %v962_v4 = vrot.slane %v946_v55, 1  ;;  %v950_v15 = vrot.slane %v946_v55, 7  ;;  %v2169_v58 = vld [vmem:[#allocation8 + $0x18] sm:$0xff]  }
 0x212   :  { %v2017_v59 = vunpack.c.h.bf16 %v2169_v58 }
 0x213   :  { %v947_v0 = vmax.f32 %v3015_v60, 0.0  ;;  %v965_v1 = vsel %vm547_vm1, %v961_v52, %v962_v4  ;;  %v953_v16 = vsel %vm534_vm0, %v949_v14, %v950_v15  ;;  %v2184_v52 = vld [vmem:[#allocation8 + $0x90] sm:$0xff]  }
 0x214   :  { %2559 = vmatmul.mubr.msk.f32.vlgmr.msra.gmra.mxu1 %vm2914_vm3, %v965_v1  ;;  %v2176_v1 = vld [vmem:[#allocation8 + $0x50] sm:$0xff]  }
 0x215   :  { %v951_v7 = vrot.slane %v947_v0, 7  ;;  %v963_v8 = vrot.slane %v947_v0, 1  ;;  %2565 = vmatpush3.msra.mxu1 %v2097_v12  ;;  %v954_v12 = vsel %vm534_vm0, %v948_v57, %v949_v14  ;;  %v2045_v6 = vunpack.c.h.bf16 %v2176_v1 }
 0x216   :  { %2566 = vmatprep.subr.mxu1 %v2096_v63 }
 0x217   :  { %v955_v9 = vsel %vm534_vm0, %v951_v7, %v948_v57  ;;  %v964_v10 = vsel %vm547_vm1, %v962_v4, %v963_v8  ;;  %v967_v13 = vsel %vm547_vm1, %v963_v8, %v960_v51  ;;  %2567 = vmatpush3.msra.mxu1 %v2096_v63  ;;  %v952_v17 = vsel %vm534_vm0, %v950_v15, %v951_v7  ;;  %v2177_v51 = vld [vmem:[#allocation8 + $0x58] sm:$0xff]   ;;  %v2168_v7 = vld [vmem:[#allocation8 + $0x10] sm:$0xff]   ;;  %v2167_v15 = vld [vmem:[#allocation8 + $0x8] sm:$0xff]  }
 0x218   :  { %1690 = vmatmul.mubr.msk.f32.vlgmr.msra.gmra.mxu0 %vm2902_vm2, %v955_v9  ;;  %2561 = vmatprep.mubr.f32.mxu1 %v964_v10  ;;  %v2049_v54 = vunpack.c.h.bf16 %v2177_v51  ;;  %v2048_v4 = vunpack.c.l.bf16 %v2177_v51  ;;  %v2076_v63 = vunpack.c.l.bf16 %v2184_v52  ;;  %v2073_v57 = vunpack.c.h.bf16 %v2183_v5  ;;  %v2175_v10 = vld [vmem:[#allocation8 + $0x48] sm:$0xff]  }
 0x219   :  { %1047 = vmatprep.mubr.f32.mxu0 %v945_v46  ;;  %2562 = vmatmul.mubr.msk.f32.gmra.mxu1 %vm2928_vm4, %v967_v13  ;;  %v2021_v46 = vunpack.c.h.bf16 %v2170_v45  ;;  %v2013_v8 = vunpack.c.h.bf16 %v2168_v7  ;;  %v2012_v9 = vunpack.c.l.bf16 %v2168_v7  ;;  %v2182_v13 = vld [vmem:[#allocation8 + $0x80] sm:$0xff]   ;;  %v2041_v14 = vunpack.c.h.bf16 %v2175_v10 }
 0x21a   :  { %2568 = vmatprep.subr.mxu1 %v2093_v2  ;;  %2387 = vmatpush3.msra.mxu0 %v2033_v3  ;;  %v2072_v3 = vunpack.c.l.bf16 %v2183_v5 }
 0x21b   :  { %2569 = vmatpush3.msra.mxu1 %v2093_v2  ;;  %2388 = vmatprep.subr.mxu0 %v2064_v18  ;;  %v2044_v2 = vunpack.c.l.bf16 %v2176_v1  ;;  %v2068_v18 = vunpack.c.l.bf16 %v2182_v13 }
 0x21c   :  { %1048 = vmatmul.mubr.f32.gmra.mxu0 %v954_v12  ;;  %2570 = vmatprep.subr.mxu1 %v2092_v19  ;;  %v2069_v12 = vunpack.c.h.bf16 %v2182_v13 }
 0x21d   :  { %1052 = vmatprep.mubr.f32.mxu0 %v946_v55  ;;  %2389 = vmatpush3.msra.mxu0 %v2032_v20  ;;  %v2077_v55 = vunpack.c.h.bf16 %v2184_v52  ;;  %v2174_v20 = vld [vmem:[#allocation8 + $0x40] sm:$0xff]  }
 0x21e   :  { %2571 = vmatpush3.msra.mxu1 %v2092_v19  ;;  %2390 = vmatprep.subr.mxu0 %v2061_v23  ;;  %v2008_v19 = vunpack.c.l.bf16 %v2167_v15  ;;  %v2037_v21 = vunpack.c.h.bf16 %v2174_v20  ;;  %v2005_v23 = vunpack.c.h.bf16 %v2003_v22  ;;  %v1377_v22 = vld [vmem:[#allocation10 + $0xa8] sm:$0xff] }
 0x21f   :  { %2572 = vmatprep.subr.mxu1 %v2089_v24  ;;  %2391 = vmatpush3.msra.mxu0 %v2029_v26  ;;  %v1387_v26 = vld [vmem:[#allocation10 + $0xf8] sm:$0xff] }
 0x220   :  { %1692 = vmatmul.mubr.msk.f32.gmra.mxu0 %vm2935_vm5, %v953_v16  ;;  %2573 = vmatpush3.msra.mxu1 %v2089_v24  ;;  %v2009_v16 = vunpack.c.h.bf16 %v2167_v15  ;;  %v2036_v24 = vunpack.c.l.bf16 %v2174_v20 }
 0x221   :  { %1057 = vmatprep.mubr.f32.mxu0 %v947_v0  ;;  %2392 = vmatprep.subr.mxu0 %v2060_v27  ;;  %v2016_v0 = vunpack.c.l.bf16 %v2169_v58 }
 0x222   :  { %2574 = vmatprep.subr.mxu1 %v2088_v28  ;;  %2393 = vmatpush3.msra.mxu0 %v2028_v29  ;;  %v1688_v29 = vld [vmem:[%s3138_s7] ss:$0 sm:$0xff] }
 0x223   :  { %2575 = vmatpush3.msra.mxu1 %v2088_v28  ;;  %2394 = vmatprep.subr.mxu0 %v2057_v32 }
 0x224   :  { %1058 = vmatmul.mubr.f32.gmra.mxu0 %v952_v17  ;;  %2576 = vmatprep.subr.mxu1 %v2085_v33  ;;  %v2040_v17 = vunpack.c.l.bf16 %v2175_v10 }
 0x225   :  { %2395 = vmatpush3.msra.mxu0 %v2025_v36  ;;  %2577 = vmatpush3.msra.mxu1 %v2085_v33 }
 0x226   :  { %2396 = vmatprep.subr.mxu0 %v2056_v37  ;;  %2578 = vmatprep.subr.mxu1 %v2084_v38 }
 0x227   :  { %2397 = vmatpush3.msra.mxu0 %v2024_v40  ;;  %2579 = vmatpush3.msra.mxu1 %v2084_v38 }
 0x228   :  { %2398 = vmatprep.subr.mxu0 %v2053_v43  ;;  %2580 = vmatprep.subr.mxu1 %v2081_v44 }
 0x229   :  { %2399 = vmatpush3.msra.mxu0 %v2021_v46  ;;  %2581 = vmatpush3.msra.mxu1 %v2081_v44 }
 0x22a   :  { %2400 = vmatprep.subr.mxu0 %v2052_v47  ;;  %2582 = vmatprep.subr.mxu1 %v2080_v48 }
 0x22b   :  { %2401 = vmatpush3.msra.mxu0 %v2020_v49  ;;  %2583 = vmatpush3.msra.mxu1 %v2080_v48 }
 0x22c   :  { %2402 = vmatprep.subr.mxu0 %v2049_v54  ;;  %2584 = vmatprep.subr.mxu1 %v2077_v55 }
 0x22d   :  { %2403 = vmatpush3.msra.mxu0 %v2017_v59  ;;  %2585 = vmatpush3.msra.mxu1 %v2077_v55 }
 0x22e   :  { %2404 = vmatprep.subr.mxu0 %v2048_v4  ;;  %2586 = vmatprep.subr.mxu1 %v2076_v63 }
 0x22f   :  { %2405 = vmatpush3.msra.mxu0 %v2016_v0  ;;  %2587 = vmatpush3.msra.mxu1 %v2076_v63 }
 0x230   :  { %2406 = vmatprep.subr.mxu0 %v2045_v6  ;;  %2588 = vmatprep.subr.mxu1 %v2073_v57 }
 0x231   :  { %2407 = vmatpush3.msra.mxu0 %v2013_v8  ;;  %2589 = vmatpush3.msra.mxu1 %v2073_v57 }
 0x232   :  { %2408 = vmatprep.subr.mxu0 %v2044_v2  ;;  %2590 = vmatprep.subr.mxu1 %v2072_v3 }
 0x233   :  { %2409 = vmatpush3.msra.mxu0 %v2012_v9  ;;  %2591 = vmatpush3.msra.mxu1 %v2072_v3 }
 0x234   :  { %2410 = vmatprep.subr.mxu0 %v2041_v14  ;;  %2592 = vmatprep.subr.mxu1 %v2069_v12  ;;  %v1386_v14 = vld [vmem:[#allocation10 + $0xf0] sm:$0xff] }
 0x235   :  { %2411 = vmatpush3.msra.mxu0 %v2009_v16  ;;  %2593 = vmatpush3.msra.mxu1 %v2069_v12  ;;  %v1384_v12 = vld [vmem:[#allocation10 + $0xe0] sm:$0xff] }
 0x236   :  { %2412 = vmatprep.subr.mxu0 %v2040_v17  ;;  %2594 = vmatprep.subr.mxu1 %v2068_v18  ;;  %v1383_v17 = vld [vmem:[#allocation10 + $0xd8] sm:$0xff] }
 0x237   :  { %2413 = vmatpush3.msra.mxu0 %v2008_v19  ;;  %2595 = vmatpush3.msra.mxu1 %v2068_v18  ;;  %v1382_v18 = vld [vmem:[#allocation10 + $0xd0] sm:$0xff]  ;;  %v1380_v19 = vld [vmem:[#allocation10 + $0xc0] sm:$0xff] }
 0x238   :  { %2414 = vmatprep.subr.mxu0 %v2037_v21  ;;  %v1378_v21 = vld [vmem:[#allocation10 + $0xb0] sm:$0xff] }
 0x239   :  { %2415 = vmatpush3.msra.mxu0 %v2005_v23  ;;  %v1376_v23 = vld [vmem:[#allocation10 + $0xa0] sm:$0xff] }
 0x23a   :  { %2416 = vmatprep.subr.mxu0 %v2036_v24 }
 0x23b   :  { %2417 = vmatpush3.msra.mxu0 %v2004_v25  ;;  %v1375_v25 = vld [vmem:[#allocation10 + $0x98] sm:$0xff] }
 0x23c   :  { %1400 = vmatprep.subr.mxu0 %v1387_v26  ;;  %v1374_v26 = vld [vmem:[#allocation10 + $0x90] sm:$0xff] }
 0x2d4   :  { %v2560_v28 = vpop.f32.mrf.mxu1 }
 0x2d6   :  { %v1129_v35 = vpop.f32.mrf.mxu1 }
 0x2d8   :  { %v2354_v27 = vpop.f32.mrf.mxu0 }
 0x2d9   :  { %v2563_v43 = vpop.f32.mrf.mxu1 }
 0x2da   :  { %v2355_v11 = vpop.f32.mrf.mxu0 }
 0x2db   :  { %v2356_v30 = vadd.f32 %v2355_v11, %v2354_v27  ;;  %v1139_v51 = vpop.f32.mrf.mxu1  ;;  %v1373_v27 = vld [vmem:[#allocation10 + $0x88] sm:$0xff] }
 0x2dc   :  { %v2357_v32 = vpop.f32.mrf.mxu0  ;;  %v1369_v11 = vld [vmem:[#allocation10 + $0x68] sm:$0xff] }
 0x2dd   :  { %v1045_v33 = vadd.f32 %v2356_v30, %v1688_v29  ;;  %v1368_v30 = vld [vmem:[#allocation10 + $0x60] sm:$0xff] }
 0x2de   :  { %v2358_v36 = vpop.f32.mrf.mxu0 }
 0x2df   :  { %v2359_v37 = vadd.f32 %v2358_v36, %v2357_v32  ;;  %v1130_v38 = vadd.f32 %v1129_v35, %v1045_v33  ;;  %v1367_v32 = vld [vmem:[#allocation10 + $0x58] sm:$0xff]  ;;  %v1366_v33 = vld [vmem:[#allocation10 + $0x50] sm:$0xff]  ;;  %v1365_v35 = vld [vmem:[#allocation10 + $0x48] sm:$0xff] }
 0x2e0   :  { %v2360_v40 = vpop.f32.mrf.mxu0  ;;  %v1364_v36 = vld [vmem:[#allocation10 + $0x40] sm:$0xff] }
 0x2e1   :  { %v1050_v41 = vadd.f32 %v2359_v37, %v1688_v29  ;;  %v1148_v42 = vmax.f32 %v1130_v38, 0.0  ;;  %v1363_v37 = vld [vmem:[#allocation10 + $0x38] sm:$0xff]  ;;  %v1362_v38 = vld [vmem:[#allocation10 + $0x30] sm:$0xff] }
 0x2e2   :  { %v2361_v44 = vpop.f32.mrf.mxu0 }
 0x2e3   :  { %v1135_v45 = vadd.f32 %v2560_v28, %v1050_v41  ;;  %v2362_v46 = vadd.f32 %v2361_v44, %v2360_v40  ;;  %1246 = vmatprep.mubr.f32.mxu0 %v1148_v42  ;;  %v1164_v58 = vrot.slane %v1148_v42, 1  ;;  %v1152_v7 = vrot.slane %v1148_v42, 7  ;;  %v1371_v28 = vld [vmem:[#allocation10 + $0x78] sm:$0xff]  ;;  %v1361_v40 = vld [vmem:[#allocation10 + $0x28] sm:$0xff]  ;;  %v1360_v41 = vld [vmem:[#allocation10 + $0x20] sm:$0xff] }
 0x2e4   :  { %v2363_v47 = vpop.f32.mrf.mxu0  ;;  %v1359_v42 = vld [vmem:[#allocation10 + $0x18] sm:$0xff]  ;;  %v1357_v44 = vld [vmem:[#allocation10 + $0x8] sm:$0xff] }
 0x2e5   :  { %v1149_v48 = vmax.f32 %v1135_v45, 0.0  ;;  %v1055_v49 = vadd.f32 %v2362_v46, %v1688_v29  ;;  %v1356_v45 = vld [vmem:[#allocation10] sm:$0xff]  ;;  %v2750_v46 = vmov 0.0  }
 0x2e6   :  { %v2364_v52 = vpop.f32.mrf.mxu0 }
 0x2e7   :  { %v1140_v54 = vadd.f32 %v1139_v51, %v1055_v49  ;;  %v2365_v55 = vadd.f32 %v2364_v52, %v2363_v47  ;;  %v1165_v59 = vrot.slane %v1149_v48, 1  ;;  %v1153_v13 = vrot.slane %v1149_v48, 7  ;;  %v1697_v49 = vld [vmem:[%s3140_s9] ss:$0 sm:$0xff] }
 0x2e9   :  { %v1150_v4 = vmax.f32 %v1140_v54, 0.0  ;;  %v1060_v63 = vadd.f32 %v2365_v55, %v1688_v29  ;;  %v1170_v0 = vsel %vm547_vm1, %v1164_v58, %v1165_v59  ;;  %v1158_v15 = vsel %vm534_vm0, %v1152_v7, %v1153_v13  ;;  %v1370_v29 = vld [vmem:[#allocation10 + $0x70] sm:$0xff] }
 0x2ea   :  { %2596 = vmatprep.mubr.f32.mxu1 %v1170_v0 }
 0x2eb   :  { %v1166_v1 = vrot.slane %v1150_v4, 1  ;;  %v1145_v5 = vadd.f32 %v2563_v43, %v1060_v63  ;;  %v1154_v16 = vrot.slane %v1150_v4, 7  ;;  %v1358_v43 = vld [vmem:[#allocation10 + $0x10] sm:$0xff] }
 0x2ed   :  { %v1151_v6 = vmax.f32 %v1145_v5, 0.0  ;;  %v1169_v57 = vsel %vm547_vm1, %v1165_v59, %v1166_v1  ;;  %v1157_v20 = vsel %vm534_vm0, %v1153_v13, %v1154_v16 }
 0x2ee   :  { %2597 = vmatmul.mubr.msk.f32.vlgmr.msra.gmra.mxu1 %vm2914_vm3, %v1169_v57 }
 0x2ef   :  { %v1155_v8 = vrot.slane %v1151_v6, 7  ;;  %v1167_v2 = vrot.slane %v1151_v6, 1 }
 0x2f1   :  { %v1159_v3 = vsel %vm534_vm0, %v1155_v8, %v1152_v7  ;;  %v1168_v9 = vsel %vm547_vm1, %v1166_v1, %v1167_v2  ;;  %v1171_v10 = vsel %vm547_vm1, %v1167_v2, %v1164_v58  ;;  %v1156_v24 = vsel %vm534_vm0, %v1154_v16, %v1155_v8 }
 0x2f2   :  { %1699 = vmatmul.mubr.msk.f32.vlgmr.msra.gmra.mxu0 %vm2902_vm2, %v1159_v3  ;;  %2599 = vmatprep.mubr.f32.mxu1 %v1168_v9 }
 0x2f3   :  { %1251 = vmatprep.mubr.f32.mxu0 %v1149_v48  ;;  %2600 = vmatmul.mubr.msk.f32.gmra.mxu1 %vm2928_vm4, %v1171_v10 }
 0x2f4   :  { %1401 = vmatpush1.msra.mxu0 %v1386_v14  ;;  %1586 = vmatprep.mubr.f32.mxu1 %v2750_v46 }
 0x2f5   :  { %1402 = vmatprep.subr.mxu0 %v1385_v39 }
 0x2f6   :  { %1252 = vmatmul.mubr.f32.gmra.mxu0 %v1158_v15 }
 0x2f7   :  { %1256 = vmatprep.mubr.f32.mxu0 %v1150_v4  ;;  %1403 = vmatpush1.msra.mxu0 %v1384_v12 }
 0x2f8   :  { %1404 = vmatprep.subr.mxu0 %v1383_v17 }
 0x2f9   :  { %1405 = vmatpush1.msra.mxu0 %v1382_v18 }
 0x2fa   :  { %1701 = vmatmul.mubr.msk.f32.gmra.mxu0 %vm2935_vm5, %v1157_v20  ;;  %1406 = vmatprep.subr.mxu0 %v1381_v31  ;;  %v1396_v20 = vsub.s32 1, %v2862_v61 }
 0x2fb   :  { %1261 = vmatprep.mubr.f32.mxu0 %v1151_v6  ;;  %1407 = vmatpush1.msra.mxu0 %v1380_v19 }
 0x2fc   :  { %1408 = vmatprep.subr.mxu0 %v1379_v50  ;;  %v1392_v50 = vsub.s32 0, %v2862_v61 }
 0x2fd   :  { %1409 = vmatpush1.msra.mxu0 %v1378_v21 }
 0x2fe   :  { %1262 = vmatmul.mubr.f32.gmra.mxu0 %v1156_v24  ;;  %1410 = vmatprep.subr.mxu0 %v1377_v22 }
 0x2ff   :  { %1411 = vmatpush1.msra.mxu0 %v1376_v23  ;;  %1464 = vmatprep.mubr.f32.mxu0 %v2750_v46 }
 0x300   :  { %1412 = vmatprep.subr.mxu0 %v1375_v25 }
 0x301   :  { %1413 = vmatpush1.msra.mxu0 %v1374_v26 }
 0x302   :  { %1414 = vmatprep.subr.mxu0 %v1373_v27 }
 0x303   :  { %1415 = vmatpush1.msra.mxu0 %v1372_v53 }
 0x304   :  { %1416 = vmatprep.subr.mxu0 %v1371_v28 }
 0x305   :  { %1417 = vmatpush1.msra.mxu0 %v1370_v29 }
 0x306   :  { %1418 = vmatprep.subr.mxu0 %v1369_v11 }
 0x307   :  { %1419 = vmatpush1.msra.mxu0 %v1368_v30  ;;  %v1489_v30 = vld [vmem:[%s3143_s12] sm:$0xff] }
 0x308   :  { %1420 = vmatprep.subr.mxu0 %v1367_v32  ;;  %v1490_v32 = vld [vmem:[%s3143_s12 + $0x8] sm:$0xff] }
 0x309   :  { %1421 = vmatpush1.msra.mxu0 %v1366_v33  ;;  %v1491_v33 = vld [vmem:[%s3143_s12 + $0x10] sm:$0xff] }
 0x30a   :  { %1422 = vmatprep.subr.mxu0 %v1365_v35  ;;  %v1492_v35 = vld [vmem:[%s3143_s12 + $0x18] sm:$0xff] }
 0x30b   :  { %1423 = vmatpush1.msra.mxu0 %v1364_v36  ;;  %v1493_v36 = vld [vmem:[%s3143_s12 + $0x20] sm:$0xff] }
 0x30c   :  { %1424 = vmatprep.subr.mxu0 %v1363_v37  ;;  %v1494_v37 = vld [vmem:[%s3143_s12 + $0x28] sm:$0xff] }
 0x30d   :  { %1425 = vmatpush1.msra.mxu0 %v1362_v38  ;;  %v1495_v38 = vld [vmem:[%s3143_s12 + $0x30] sm:$0xff] }
 0x30e   :  { %1426 = vmatprep.subr.mxu0 %v1361_v40  ;;  %v1496_v40 = vld [vmem:[%s3143_s12 + $0x38] sm:$0xff]  ;;  %s2751_s12 = smov [#allocation11]  }
 0x30f   :  { %1427 = vmatpush1.msra.mxu0 %v1360_v41  ;;  %s1656_s8 = sshll.u32 %s2751_s12, 4  ;;  %s1657_s8 = int_to_ptr.vmem [resolvable:$true] %s1656_s8 }
 0x310   :  { %1428 = vmatprep.subr.mxu0 %v1359_v42  ;;  %s2713_s26 = scalar_lea.vmem %s1657_s8, 2048  ;;  %p2718_p12 = scmp.lt.s32.totalorder %s1657_s8, %s1657_s8 }
 0x311   :  { %1429 = vmatpush1.msra.mxu0 %v1358_v43  ;;  %p2714_p11 = scmp.ne.s32.totalorder %s1657_s8, %s2713_s26  ;;  %p2719_p13 = scmp.lt.s32.totalorder %s2713_s26, %s2713_s26 }
 0x312   :  { %1430 = vmatprep.subr.mxu0 %v1357_v44 }
 0x313   :  { %1431 = vmatpush1.msra.mxu0 %v1356_v45  ;;  %p2720_p0 = por %p2719_p13, %p2718_p12 }
 0x315   :  { %p2721_p1 = pnand %p2720_p0, %p2714_p11 }
 0x3ae   :  { %v2598_v48 = vpop.f32.mrf.mxu1 }
 0x3b0   :  { %v1333_v58 = vpop.f32.mrf.mxu1 }
 0x3b2   :  { %v2418_v47 = vpop.f32.mrf.mxu0 }
 0x3b3   :  { %v2601_v6 = vpop.f32.mrf.mxu1 }
 0x3b4   :  { %v2419_v51 = vpop.f32.mrf.mxu0 }
 0x3b5   :  { %v2420_v52 = vadd.f32 %v2419_v51, %v2418_v47  ;;  %v1343_v10 = vpop.f32.mrf.mxu1 }
 0x3b6   :  { %v2421_v54 = vpop.f32.mrf.mxu0 }
 0x3b7   :  { %v1249_v55 = vadd.f32 %v2420_v52, %v1697_v49 }
 0x3b8   :  { %v2422_v59 = vpop.f32.mrf.mxu0 }
 0x3b9   :  { %v1334_v4 = vadd.f32 %v1333_v58, %v1249_v55  ;;  %v2423_v63 = vadd.f32 %v2422_v59, %v2421_v54 }
 0x3ba   :  { %v2424_v0 = vpop.f32.mrf.mxu0 }
 0x3bb   :  { %v1352_v1 = vadd.f32 %v1334_v4, %v2992_v34  ;;  %v1254_v5 = vadd.f32 %v2423_v63, %v1697_v49 }
 0x3bc   :  { %v2425_v57 = vpop.f32.mrf.mxu0 }
 0x3bd   :  { %v1339_v7 = vadd.f32 %v2598_v48, %v1254_v5  ;;  %v2426_v8 = vadd.f32 %v2425_v57, %v2424_v0  ;;  %1465 = vmatmul.mubr.f32.vlgmr.msra.gmra.mxu0 %v1352_v1 }
 0x3be   :  { %v2427_v2 = vpop.f32.mrf.mxu0  ;;  %1470 = vmatprep.mubr.f32.mxu0 %v2750_v46 }
 0x3bf   :  { %v1259_v3 = vadd.f32 %v2426_v8, %v1697_v49  ;;  %v1353_v9 = vadd.f32 %v1339_v7, %v2999_v56 }
 0x3c0   :  { %v2428_v13 = vpop.f32.mrf.mxu0 }
 0x3c1   :  { %v1344_v14 = vadd.f32 %v1343_v10, %v1259_v3  ;;  %v2429_v39 = vadd.f32 %v2428_v13, %v2427_v2  ;;  %1471 = vmatmul.mubr.f32.gmra.mxu0 %v1353_v9 }
 0x3c2   :  { %1476 = vmatprep.mubr.f32.mxu0 %v2750_v46 }
 0x3c3   :  { %v1264_v34 = vadd.f32 %v2429_v39, %v1697_v49  ;;  %v1354_v12 = vadd.f32 %v1344_v14, %v3006_v62  ;;  %v1388_v62 = vld [vmem:[%s3142_s11] sm:$0x3] }
 0x3c4   :  { %v1397_v23 = vrot.slane %v1388_v62, %v1396_v20  ;;  %v1393_v24 = vrot.slane %v1388_v62, %v1392_v50 }
 0x3c5   :  { %v1349_v15 = vadd.f32 %v2601_v6, %v1264_v34  ;;  %1477 = vmatmul.mubr.f32.gmra.mxu0 %v1354_v12 }
 0x3c6   :  { %1482 = vmatprep.mubr.f32.mxu0 %v2750_v46 }
 0x3c7   :  { %v1355_v16 = vadd.f32 %v1349_v15, %v3015_v60 }
 0x3c9   :  { %1483 = vmatmul.mubr.f32.gmra.mxu0 %v1355_v16 }
 0x47d   :  { %v1466_v17 = vpop.f32.mrf.mxu0 }
 0x47e   :  { %v1467_v11 = vadd.f32 %v1466_v17, %v1393_v24 }
 0x47f   :  { %v1468_v18 = vpop.f32.mrf.mxu0 }
 0x480   :  { %v1469_v61 = vadd.f32 %v1468_v18, %v1397_v23 }
 0x481   :  { %v1472_v56 = vpop.f32.mrf.mxu0 }
 0x482   :  { %v1473_v29 = vadd.f32 %v1472_v56, %v1393_v24 }
 0x483   :  { %v1474_v31 = vpop.f32.mrf.mxu0 }
 0x484   :  { %v1475_v28 = vadd.f32 %v1474_v31, %v1397_v23 }
 0x485   :  { %v1478_v19 = vpop.f32.mrf.mxu0 }
 0x486   :  { %v1479_v53 = vadd.f32 %v1478_v19, %v1393_v24 }
 0x487   :  { %v1480_v21 = vpop.f32.mrf.mxu0 }
 0x488   :  { %v1481_v27 = vadd.f32 %v1480_v21, %v1397_v23 }
 0x489   :  { %v1484_v22 = vpop.f32.mrf.mxu0 }
 0x48a   :  { %v1485_v26 = vadd.f32 %v1484_v22, %v1393_v24 }
 0x48b   :  { %v1486_v25 = vpop.f32.mrf.mxu0 }
 0x48c   :  { %v1487_v60 = vadd.f32 %v1486_v25, %v1397_v23 }
 0x48e   :  { %1546 = vmatprep.subr.mxu1 %v1487_v60 }
 0x48f   :  { %1547 = vmatpush1.msra.mxu1 %v1485_v26 }
 0x490   :  { %1548 = vmatprep.subr.mxu1 %v1481_v27 }
 0x491   :  { %1549 = vmatpush1.msra.mxu1 %v1479_v53 }
 0x492   :  { %1550 = vmatprep.subr.mxu1 %v1475_v28 }
 0x493   :  { %1551 = vmatpush1.msra.mxu1 %v1473_v29 }
 0x494   :  { %1552 = vmatprep.subr.mxu1 %v1469_v61 }
 0x495   :  { %1553 = vmatpush1.msra.mxu1 %v1467_v11 }
 0x496   :  { %1706 = vmatmul.mubr.msk.f32.vlgmr.msra.gmra.mxu1 %vm1497_vm6, %v1489_v30 }
 0x497   :  { %1592 = vmatprep.mubr.f32.mxu1 %v2750_v46 }
 0x49a   :  { %1707 = vmatmul.mubr.msk.f32.gmra.mxu1 %vm1497_vm6, %v1490_v32 }
 0x49b   :  { %1598 = vmatprep.mubr.f32.mxu1 %v2750_v46 }
 0x49e   :  { %1708 = vmatmul.mubr.msk.f32.gmra.mxu1 %vm1497_vm6, %v1491_v33 }
 0x49f   :  { %1604 = vmatprep.mubr.f32.mxu1 %v2750_v46 }
 0x4a2   :  { %1709 = vmatmul.mubr.msk.f32.gmra.mxu1 %vm1497_vm6, %v1492_v35 }
 0x4a3   :  { %1610 = vmatprep.mubr.f32.mxu1 %v2750_v46 }
 0x4a6   :  { %1710 = vmatmul.mubr.msk.f32.gmra.mxu1 %vm1497_vm6, %v1493_v36 }
 0x4a7   :  { %1616 = vmatprep.mubr.f32.mxu1 %v2750_v46 }
 0x4aa   :  { %1711 = vmatmul.mubr.msk.f32.gmra.mxu1 %vm1497_vm6, %v1494_v37 }
 0x4ab   :  { %1622 = vmatprep.mubr.f32.mxu1 %v2750_v46 }
 0x4ae   :  { %1712 = vmatmul.mubr.msk.f32.gmra.mxu1 %vm1497_vm6, %v1495_v38 }
 0x4af   :  { %1628 = vmatprep.mubr.f32.mxu1 %v2750_v46 }
 0x4b2   :  { %1713 = vmatmul.mubr.msk.f32.gmra.mxu1 %vm1497_vm6, %v1496_v40 }
 0x556   :  { %v1588_v41 = vpop.f32.mrf.mxu1 }
 0x557   :  { %1635 = vst [vmem:[#allocation11] sm:$0xff] %v1588_v41 }
 0x558   :  { %v1590_v42 = vpop.f32.mrf.mxu1 }
 0x559   :  { %1636 = vst [vmem:[#allocation11 + $0x8] sm:$0xff] %v1590_v42 }
 0x55a   :  { %v1594_v43 = vpop.f32.mrf.mxu1 }
 0x55b   :  { %1637 = vst [vmem:[#allocation11 + $0x10] sm:$0xff] %v1594_v43 }
 0x55c   :  { %v1596_v44 = vpop.f32.mrf.mxu1 }
 0x55d   :  { %1638 = vst [vmem:[#allocation11 + $0x18] sm:$0xff] %v1596_v44 }
 0x55e   :  { %v1600_v45 = vpop.f32.mrf.mxu1 }
 0x55f   :  { %1639 = vst [vmem:[#allocation11 + $0x20] sm:$0xff] %v1600_v45 }
 0x560   :  { %v1602_v47 = vpop.f32.mrf.mxu1 }
 0x561   :  { %1640 = vst [vmem:[#allocation11 + $0x28] sm:$0xff] %v1602_v47 }
 0x562   :  { %v1606_v48 = vpop.f32.mrf.mxu1 }
 0x563   :  { %1641 = vst [vmem:[#allocation11 + $0x30] sm:$0xff] %v1606_v48 }
 0x564   :  { %v1608_v46 = vpop.f32.mrf.mxu1 }
 0x565   :  { %1642 = vst [vmem:[#allocation11 + $0x38] sm:$0xff] %v1608_v46 }
 0x566   :  { %v1612_v49 = vpop.f32.mrf.mxu1 }
 0x567   :  { %1643 = vst [vmem:[#allocation11 + $0x40] sm:$0xff] %v1612_v49 }
 0x568   :  { %v1614_v51 = vpop.f32.mrf.mxu1 }
 0x569   :  { %1644 = vst [vmem:[#allocation11 + $0x48] sm:$0xff] %v1614_v51 }
 0x56a   :  { %v1618_v52 = vpop.f32.mrf.mxu1 }
 0x56b   :  { %1645 = vst [vmem:[#allocation11 + $0x50] sm:$0xff] %v1618_v52 }
 0x56c   :  { %v1620_v54 = vpop.f32.mrf.mxu1 }
 0x56d   :  { %1646 = vst [vmem:[#allocation11 + $0x58] sm:$0xff] %v1620_v54 }
 0x56e   :  { %v1624_v55 = vpop.f32.mrf.mxu1 }
 0x56f   :  { %1647 = vst [vmem:[#allocation11 + $0x60] sm:$0xff] %v1624_v55 }
 0x570   :  { %v1626_v58 = vpop.f32.mrf.mxu1 }
 0x571   :  { %1648 = vst [vmem:[#allocation11 + $0x68] sm:$0xff] %v1626_v58 }
 0x572   :  { %v1630_v59 = vpop.f32.mrf.mxu1 }
 0x573   :  { %1649 = vst [vmem:[#allocation11 + $0x70] sm:$0xff] %v1630_v59 }
 0x574   :  { %v1632_v4 = vpop.f32.mrf.mxu1 }
 0x575   :  { %1650 = vst [vmem:[#allocation11 + $0x78] sm:$0xff] %v1632_v4 }
 0x576   :  { %2724 = shalt.err (!%p2721_p1)
}
 0x577   :  { %1662 = dma.vmem_to_hbm [thread:$0]  %s1657_s8, 2048, %s3144_s13, [#allocation4], %s2748_s2, %s2748_s2, %s2749_s16  }
 0x578   :  { %2739 = dma.done.wait [#allocation4], 2048  }
 0x579   :  { %2740 = vsyncadd [#allocation4], 4294965248 }
 0x57a   :  { %1666 = vsyncpa [#allocation3], 1 }
 0x57b   :  { %1667 = vsyncpa [#allocation6], 1 }
 0x57c   :  { %1668 = vsyncpa [#allocation9], 1 }
 0x57d   :  { %1669 = vsyncpa [#allocation4], 1 }

</bundles_post_ra>
